<compile_context>
chip_gen: v5e
topology: v5e:2x2
jax: 0.10.0
libtpu: 0.0.40
codegen_flags: <defaults>
</compile_context>

<pallas_src>
import functools

import jax
import jax.numpy as jnp
from jax.experimental import pallas as pl
from jax.experimental.pallas import tpu as pltpu


def critic_kernel(x_ref, w1_ref, w2t_ref, b2_ref, o_ref):
    # Layer 1 on the MXU: [TM, 4] @ [4, 100]; bias b1 rides in the ones column.
    h = jnp.dot(x_ref[...], w1_ref[...], preferred_element_type=jnp.float32)
    h = jnp.maximum(h, 0.0)
    # Value head: elementwise multiply (VPU) + lane reduction (XLU) instead of
    # an N=1 MXU matmul.  b2 is a scalar read from SMEM.
    v = jnp.sum(h * w2t_ref[...], axis=-1) + b2_ref[0, 0]          # [TM]
    # Lane-dense store: one (1, TM) row instead of a (TM, 1) masked column.
    o_ref[...] = v[None, :].astype(o_ref.dtype)


@functools.partial(jax.jit, static_argnames=("tm",))
def critic_forward(x, w1, b1, w2, b2, *, tm=256):
    B = x.shape[0]

    # Fold b1 into W1 with an augmented ones column; pre-transpose w2 to a row.
    x_aug = jnp.concatenate([x, jnp.ones((B, 1), x.dtype)], axis=1)     # [B, 4]
    w1_aug = jnp.concatenate([w1, b1.reshape(1, -1)], axis=0)           # [4, 100]
    w2t = w2.reshape(1, -1)                                             # [1, 100]
    b2s = b2.reshape(1, 1)                                              # [1, 1] -> SMEM

    # Pad the batch to a multiple of the tile; padded rows are sliced off below.
    b_pad = tm * pl.cdiv(B, tm)
    if b_pad != B:
        x_aug = jnp.pad(x_aug, ((0, b_pad - B), (0, 0)))

    out = pl.pallas_call(
        critic_kernel,
        out_shape=jax.ShapeDtypeStruct((1, b_pad), jnp.float32),
        grid=(b_pad // tm,),
        in_specs=[
            pl.BlockSpec((tm, 4), lambda i: (i, 0)),            # batch-tiled x
            pl.BlockSpec((4, 100), lambda i: (0, 0)),           # resident W1|b1
            pl.BlockSpec((1, 100), lambda i: (0, 0)),           # resident w2^T
            pl.BlockSpec(memory_space=pltpu.MemorySpace.SMEM),  # scalar b2
        ],
        out_specs=pl.BlockSpec((1, tm), lambda i: (0, i)),      # lane-dense out
        compiler_params=pltpu.CompilerParams(
            dimension_semantics=("parallel",)),
    )(x_aug, w1_aug, w2t, b2s)

    return out[0, :B].reshape(B, 1)


def init_params(key):
    """Deterministic init mimicking nn.Linear defaults: U(-1/sqrt(fan_in), +)."""
    k1, k2, k3, k4 = jax.random.split(key, 4)
    bound1 = 1.0 / jnp.sqrt(3.0)     # fc: fan_in = 3
    bound2 = 1.0 / jnp.sqrt(100.0)   # v_head: fan_in = 100
    w1 = jax.random.uniform(k1, (3, 100), jnp.float32, -bound1, bound1)
    b1 = jax.random.uniform(k2, (100,), jnp.float32, -bound1, bound1)
    w2 = jax.random.uniform(k3, (100, 1), jnp.float32, -bound2, bound2)
    b2 = jax.random.uniform(k4, (1,), jnp.float32, -bound2, bound2)
    return w1, b1, w2, b2


if __name__ == "__main__":
    key = jax.random.PRNGKey(0)
    pkey, xkey, xkey2 = jax.random.split(key, 3)
    w1, b1, w2, b2 = init_params(pkey)

    def ref_fn(x):
        return jnp.maximum(x @ w1 + b1, 0.0) @ w2 + b2

    # Pendulum observation: 3-dim state; small batch of 8 (single tile path).
    x_small = jax.random.normal(xkey, (8, 3), jnp.float32)
    out_small = jax.block_until_ready(critic_forward(x_small, w1, b1, w2, b2))
    assert out_small.shape == (8, 1)
    assert jnp.allclose(out_small, ref_fn(x_small), atol=1e-4, rtol=1e-4)

    # Multi-tile batch exercising the grid, resident weights and ragged padding.
    x_big = jax.random.normal(xkey2, (600, 3), jnp.float32)
    out_big = jax.block_until_ready(critic_forward(x_big, w1, b1, w2, b2))
    assert out_big.shape == (600, 1)
    assert jnp.allclose(out_big, ref_fn(x_big), atol=1e-4, rtol=1e-4)

    print("KERNEL_OK")
</pallas_src>

<mosaic_0001>
module attributes {stable_mosaic.version = 11 : i64} {
  func.func @critic_kernel(%arg0: i32, %arg1: memref<256x4xf32, #tpu.memory_space<vmem>>, %arg2: memref<4x100xf32, #tpu.memory_space<vmem>>, %arg3: memref<1x100xf32, #tpu.memory_space<vmem>>, %arg4: memref<1x1xf32, #tpu.memory_space<smem>>, %arg5: memref<1x256xf32, #tpu.memory_space<vmem>>) attributes {dimension_semantics = [#tpu.dimension_semantics<parallel>], iteration_bounds = array<i64: 1>, scalar_prefetch = 0 : i64, scratch_operands = 0 : i64, tpu.core_type = #tpu.core_type<tc>, window_params = [{transform_indices = @transform_0, window_bounds = array<i64: 256, 4>}, {pipeline_mode = #tpu.pipeline_mode<synchronous>, transform_indices = @transform_1, window_bounds = array<i64: 4, 100>}, {pipeline_mode = #tpu.pipeline_mode<synchronous>, transform_indices = @transform_2, window_bounds = array<i64: 1, 100>}, {transform_indices = @transform_3, window_bounds = array<i64: 1, 1>}, {transform_indices = @transform_4, window_bounds = array<i64: 1, 256>}]} {
    %c0 = arith.constant 0 : index
    %c0_0 = arith.constant 0 : index
    %0 = vector.load %arg1[%c0, %c0_0] : memref<256x4xf32, #tpu.memory_space<vmem>>, vector<256x4xf32>
    %c0_1 = arith.constant 0 : index
    %c0_2 = arith.constant 0 : index
    %1 = vector.load %arg2[%c0_1, %c0_2] : memref<4x100xf32, #tpu.memory_space<vmem>>, vector<4x100xf32>
    %cst = arith.constant dense<0.000000e+00> : vector<256x100xf32>
    %2 = tpu.matmul %0, %1, %cst {dimension_numbers = #tpu.dot_dimension_numbers<[1], [0], [0], [1], [0, 0, 1, 1], [], []>} : vector<256x4xf32>, vector<4x100xf32>, vector<256x100xf32> -> vector<256x100xf32>
    %cst_3 = arith.constant 0.000000e+00 : f32
    %3 = vector.broadcast %cst_3 : f32 to vector<256x100xf32>
    %4 = arith.maximumf %2, %3 : vector<256x100xf32>
    %c0_4 = arith.constant 0 : index
    %c0_5 = arith.constant 0 : index
    %5 = vector.load %arg3[%c0_4, %c0_5] : memref<1x100xf32, #tpu.memory_space<vmem>>, vector<1x100xf32>
    %6 = vector.broadcast %5 : vector<1x100xf32> to vector<256x100xf32>
    %7 = arith.mulf %4, %6 : vector<256x100xf32>
    %cst_6 = arith.constant dense<0.000000e+00> : vector<256xf32>
    %8 = vector.multi_reduction <add>, %7, %cst_6 [1] : vector<256x100xf32> to vector<256xf32>
    %c0_7 = arith.constant 0 : index
    %c0_8 = arith.constant 0 : index
    %9 = memref.load %arg4[%c0_7, %c0_8] : memref<1x1xf32, #tpu.memory_space<smem>>
    %10 = vector.broadcast %9 : f32 to vector<256xf32>
    %11 = arith.addf %8, %10 : vector<256xf32>
    %12 = vector.shape_cast %11 : vector<256xf32> to vector<1x256xf32>
    %c0_9 = arith.constant 0 : index
    %c0_10 = arith.constant 0 : index
    %13 = vector.load %arg5[%c0_9, %c0_10] : memref<1x256xf32, #tpu.memory_space<vmem>>, vector<1x256xf32>
    tpu.vector_store %arg5[%c0_9, %c0_10], %12 {strides = array<i32>} : memref<1x256xf32, #tpu.memory_space<vmem>>, vector<1x256xf32>,
    return
  }
  func.func @transform_0(%arg0: i32) -> (i32, i32) {
    %c0_i32 = arith.constant 0 : i32
    %c0_i32_0 = arith.constant 0 : i32
    return %arg0, %c0_i32 : i32, i32
  }
  func.func @transform_1(%arg0: i32) -> (i32, i32) {
    %c0_i32 = arith.constant 0 : i32
    %c0_i32_0 = arith.constant 0 : i32
    %c0_i32_1 = arith.constant 0 : i32
    return %c0_i32, %c0_i32_0 : i32, i32
  }
  func.func @transform_2(%arg0: i32) -> (i32, i32) {
    %c0_i32 = arith.constant 0 : i32
    %c0_i32_0 = arith.constant 0 : i32
    %c0_i32_1 = arith.constant 0 : i32
    return %c0_i32, %c0_i32_0 : i32, i32
  }
  func.func @transform_3(%arg0: i32) -> (i32, i32) {
    %c0_i32 = arith.constant 0 : i32
    %c0_i32_0 = arith.constant 0 : i32
    %c0_i32_1 = arith.constant 0 : i32
    return %c0_i32, %c0_i32_0 : i32, i32
  }
  func.func @transform_4(%arg0: i32) -> (i32, i32) {
    %c0_i32 = arith.constant 0 : i32
    %c0_i32_0 = arith.constant 0 : i32
    return %c0_i32, %arg0 : i32, i32
  }
}

</mosaic_0001>

<bundles_post_ra>
// kernel: critic_forward.1
= control target key start
LH: loop header
LB: loop body
LE: loop exit
PB: predicated region body
PF: predicated region fallthrough
CT: control target
= control target key end

     0   :  { %vm148_vm0 = vcmask 1043456   ;;  %vm51_vm1 = vcmask 31744   ;;  %vm333_vm2 = vcmask 818176   ;;  %vm1148_vm3 = vcmask 130112   ;;  %s1682_s1 = inlined_call_operand.vmem [shape: f32[4,100], index: 1, kind: input, shape index: {}]   ;;  %s1683_s0 = inlined_call_operand.vmem [shape: f32[256,4], index: 0, kind: input, shape index: {}]   ;;  %s1684_s2 = inlined_call_operand.vmem [shape: f32[1,100], index: 2, kind: input, shape index: {}]   ;;  %s1685_s3 = inlined_call_operand.<no memory space> [shape: f32[1,1], index: 3, kind: input, shape index: {}]   ;;  %s1686_s4 = inlined_call_operand.vmem [shape: f32[1,256], index: 4, kind: output, shape index: {}]  }
   0x1   :  { %v50_v0 = vld [vmem:[%s1682_s1] sm:$0xf]  ;;  %v19_v3 = vld [vmem:[%s1683_s0 + $0x8] sm:$0xff]  ;;  %v20_v6 = vld [vmem:[%s1683_s0 + $0x10] sm:$0xff]  ;;  %vm1152_vm4 = vcmask 195712   ;;  %vm1156_vm5 = vcmask 261312  }
   0x2   :  { %v18_v1 = vld [vmem:[%s1683_s0] sm:$0xff]  ;;  %1250 = vmatpush.msk.msra.mxu0 %vm148_vm0, %v50_v0  ;;  %1283 = vmatpush.msk.msra.mxu1 %vm148_vm0, %v50_v0  ;;  %v27_v4 = vld [vmem:[%s1683_s0 + $0x48] sm:$0xff]  ;;  %v28_v7 = vld [vmem:[%s1683_s0 + $0x50] sm:$0xff]  ;;  %vm1160_vm6 = vcmask 326912   ;;  %vm1164_vm7 = vcmask 392512   ;;  %vm1168_vm8 = vcmask 458112  }
   0x3   :  { %v26_v2 = vld [vmem:[%s1683_s0 + $0x40] sm:$0xff]  ;;  %1251 = vmatmul.msk.f32.vlgmr.msra.gmra.mxu0 %vm51_vm1, %v18_v1  ;;  %1284 = vmatpush.msk.msra.mxu2 %vm148_vm0, %v50_v0  ;;  %v35_v8 = vld [vmem:[%s1683_s0 + $0x88] sm:$0xff]  ;;  %v21_v10 = vld [vmem:[%s1683_s0 + $0x18] sm:$0xff]  ;;  %vm1172_vm9 = vcmask 523712   ;;  %vm1176_vm10 = vcmask 589312   ;;  %vm1180_vm11 = vcmask 654912  }
   0x4   :  { %1259 = vmatmul.msk.f32.vlgmr.msra.gmra.mxu1 %vm51_vm1, %v26_v2  ;;  %1285 = vmatpush.msk.msra.mxu3 %vm148_vm0, %v50_v0  ;;  %v34_v5 = vld [vmem:[%s1683_s0 + $0x80] sm:$0xff]  ;;  %v29_v11 = vld [vmem:[%s1683_s0 + $0x58] sm:$0xff]  ;;  %v36_v12 = vld [vmem:[%s1683_s0 + $0x90] sm:$0xff]  ;;  %vm1184_vm12 = vcmask 720512   ;;  %vm1188_vm13 = vcmask 786112   ;;  %vm1192_vm14 = vcmask 851712  }
   0x5   :  { %1267 = vmatmul.msk.f32.vlgmr.msra.gmra.mxu2 %vm51_vm1, %v34_v5  ;;  %v42_v9 = vld [vmem:[%s1683_s0 + $0xc0] sm:$0xff]  ;;  %v43_v13 = vld [vmem:[%s1683_s0 + $0xc8] sm:$0xff]  ;;  %v37_v16 = vld [vmem:[%s1683_s0 + $0x98] sm:$0xff]  ;;  %vm1196_vm15 = vcmask 917312   ;;  %vm1200_vm0 = vcmask 982912  }
   0x6   :  { %1275 = vmatmul.msk.f32.vlgmr.msra.gmra.mxu3 %vm51_vm1, %v42_v9  ;;  %v22_v14 = vld [vmem:[%s1683_s0 + $0x20] sm:$0xff]  ;;  %v44_v17 = vld [vmem:[%s1683_s0 + $0xd0] sm:$0xff]  ;;  %v23_v18 = vld [vmem:[%s1683_s0 + $0x28] sm:$0xff] }
   0x7   :  { %v30_v15 = vld [vmem:[%s1683_s0 + $0x60] sm:$0xff]  ;;  %v31_v19 = vld [vmem:[%s1683_s0 + $0x68] sm:$0xff]  ;;  %v45_v21 = vld [vmem:[%s1683_s0 + $0xd8] sm:$0xff] }
   0x8   :  { %v38_v20 = vld [vmem:[%s1683_s0 + $0xa0] sm:$0xff]  ;;  %v24_v22 = vld [vmem:[%s1683_s0 + $0x30] sm:$0xff]  ;;  %v39_v24 = vld [vmem:[%s1683_s0 + $0xa8] sm:$0xff] }
   0x9   :  { %v32_v23 = vld [vmem:[%s1683_s0 + $0x70] sm:$0xff]  ;;  %v46_v25 = vld [vmem:[%s1683_s0 + $0xe0] sm:$0xff]  ;;  %v25_v26 = vld [vmem:[%s1683_s0 + $0x38] sm:$0xff] }
   0xa   :  { %v33_v27 = vld [vmem:[%s1683_s0 + $0x78] sm:$0xff]  ;;  %v40_v28 = vld [vmem:[%s1683_s0 + $0xb0] sm:$0xff]  ;;  %v47_v29 = vld [vmem:[%s1683_s0 + $0xe8] sm:$0xff] }
   0xb   :  { %1252 = vmatmul.msk.f32.gmra.mxu0 %vm51_vm1, %v19_v3  ;;  %v41_v30 = vld [vmem:[%s1683_s0 + $0xb8] sm:$0xff]  ;;  %v48_v31 = vld [vmem:[%s1683_s0 + $0xf0] sm:$0xff]  ;;  %v1451_v33 = vld [vmem:[%s1684_s2] ss:$0 sm:$0xff] }
   0xc   :  { %1260 = vmatmul.msk.f32.gmra.mxu1 %vm51_vm1, %v27_v4  ;;  %v49_v32 = vld [vmem:[%s1683_s0 + $0xf8] sm:$0xff] }
   0xd   :  { %1268 = vmatmul.msk.f32.gmra.mxu2 %vm51_vm1, %v35_v8 }
   0xe   :  { %1276 = vmatmul.msk.f32.gmra.mxu3 %vm51_vm1, %v43_v13 }
  0x13   :  { %1253 = vmatmul.msk.f32.gmra.mxu0 %vm51_vm1, %v20_v6 }
  0x14   :  { %1261 = vmatmul.msk.f32.gmra.mxu1 %vm51_vm1, %v28_v7 }
  0x15   :  { %1269 = vmatmul.msk.f32.gmra.mxu2 %vm51_vm1, %v36_v12 }
  0x16   :  { %1277 = vmatmul.msk.f32.gmra.mxu3 %vm51_vm1, %v44_v17 }
  0x1b   :  { %1254 = vmatmul.msk.f32.gmra.mxu0 %vm51_vm1, %v21_v10 }
  0x1c   :  { %1262 = vmatmul.msk.f32.gmra.mxu1 %vm51_vm1, %v29_v11 }
  0x1d   :  { %1270 = vmatmul.msk.f32.gmra.mxu2 %vm51_vm1, %v37_v16 }
  0x1e   :  { %1278 = vmatmul.msk.f32.gmra.mxu3 %vm51_vm1, %v45_v21 }
  0x23   :  { %1255 = vmatmul.msk.f32.gmra.mxu0 %vm51_vm1, %v22_v14 }
  0x24   :  { %1263 = vmatmul.msk.f32.gmra.mxu1 %vm51_vm1, %v30_v15 }
  0x25   :  { %1271 = vmatmul.msk.f32.gmra.mxu2 %vm51_vm1, %v38_v20 }
  0x26   :  { %1279 = vmatmul.msk.f32.gmra.mxu3 %vm51_vm1, %v46_v25 }
  0x2b   :  { %1256 = vmatmul.msk.f32.gmra.mxu0 %vm51_vm1, %v23_v18 }
  0x2c   :  { %1264 = vmatmul.msk.f32.gmra.mxu1 %vm51_vm1, %v31_v19 }
  0x2d   :  { %1272 = vmatmul.msk.f32.gmra.mxu2 %vm51_vm1, %v39_v24 }
  0x2e   :  { %1280 = vmatmul.msk.f32.gmra.mxu3 %vm51_vm1, %v47_v29 }
  0x33   :  { %1257 = vmatmul.msk.f32.gmra.mxu0 %vm51_vm1, %v24_v22 }
  0x34   :  { %1265 = vmatmul.msk.f32.gmra.mxu1 %vm51_vm1, %v32_v23 }
  0x35   :  { %1273 = vmatmul.msk.f32.gmra.mxu2 %vm51_vm1, %v40_v28 }
  0x36   :  { %1281 = vmatmul.msk.f32.gmra.mxu3 %vm51_vm1, %v48_v31 }
  0x3b   :  { %1258 = vmatmul.msk.f32.gmra.mxu0 %vm51_vm1, %v25_v26 }
  0x3c   :  { %1266 = vmatmul.msk.f32.gmra.mxu1 %vm51_vm1, %v33_v27 }
  0x3d   :  { %1274 = vmatmul.msk.f32.gmra.mxu2 %vm51_vm1, %v41_v30 }
  0x3e   :  { %1282 = vmatmul.msk.f32.gmra.mxu3 %vm51_vm1, %v49_v32  ;;  %vm1204_vm1 = vcmask 1048512  }
  0x80   :  { %v169_v34 = vpop.f32.mrf.mxu0 }
  0x81   :  { %v193_v35 = vpop.f32.mrf.mxu1  ;;  %v265_v36 = vmax.f32 %v169_v34, 0.0 }
  0x82   :  { %v273_v0 = vmax.f32 %v193_v35, 0.0 }
  0x83   :  { %v301_v37 = vmul.f32 %v1451_v33, %v265_v36 }
  0x84   :  { %v309_v5 = vmul.f32 %v1451_v33, %v273_v0 }
  0x85   :  { %v334_v38 = vsel %vm333_vm2, %v301_v37, 0.0 }
  0x86   :  { %335 = vadd.xlane.f32.xlu0 %v334_v38  ;;  %v358_v10 = vsel %vm333_vm2, %v309_v5, 0.0 }
  0x88   :  { %v172_v39 = vpop.f32.mrf.mxu0  ;;  %v1459_v51 = vpop.f32.mrf.mxu2 }
  0x89   :  { %v196_v40 = vpop.f32.mrf.mxu1  ;;  %v266_v41 = vmax.f32 %v172_v39, 0.0  ;;  %v1465_v61 = vpop.f32.mrf.mxu3 }
  0x8a   :  { %v274_v12 = vmax.f32 %v196_v40, 0.0 }
  0x8b   :  { %v302_v42 = vmul.f32 %v1451_v33, %v266_v41 }
  0x8c   :  { %v310_v18 = vmul.f32 %v1451_v33, %v274_v12 }
  0x8d   :  { %v337_v43 = vsel %vm333_vm2, %v302_v42, 0.0 }
  0x8e   :  { %338 = vadd.xlane.f32.xlu0 %v337_v43  ;;  %v361_v26 = vsel %vm333_vm2, %v310_v18, 0.0 }
  0x90   :  { %v175_v44 = vpop.f32.mrf.mxu0  ;;  %v220_v58 = vpop.f32.mrf.mxu2 }
  0x91   :  { %v199_v45 = vpop.f32.mrf.mxu1  ;;  %v267_v46 = vmax.f32 %v175_v44, 0.0  ;;  %v1472_v7 = vpop.f32.mrf.mxu3  ;;  %v282_v35 = vmax.f32 %v220_v58, 0.0  ;;  %v281_v44 = vmax.f32 %v1459_v51, 0.0 }
  0x92   :  { %v275_v21 = vmax.f32 %v199_v45, 0.0 }
  0x93   :  { %v303_v47 = vmul.f32 %v1451_v33, %v267_v46  ;;  %v318_v41 = vmul.f32 %v1451_v33, %v282_v35 }
  0x94   :  { %v311_v29 = vmul.f32 %v1451_v33, %v275_v21 }
  0x95   :  { %v340_v48 = vsel %vm333_vm2, %v303_v47, 0.0  ;;  %v385_v45 = vsel %vm333_vm2, %v318_v41, 0.0 }
  0x96   :  { %341 = vadd.xlane.f32.xlu1 %v340_v48  ;;  %v364_v37 = vsel %vm333_vm2, %v311_v29, 0.0 }
  0x98   :  { %v178_v49 = vpop.f32.mrf.mxu0  ;;  %v1469_v3 = vpop.f32.mrf.mxu2 }
  0x99   :  { %v268_v50 = vmax.f32 %v178_v49, 0.0  ;;  %v202_v52 = vpop.f32.mrf.mxu1  ;;  %v247_v20 = vpop.f32.mrf.mxu3  ;;  %v283_v48 = vmax.f32 %v1469_v3, 0.0 }
  0x9a   :  { %v276_v9 = vmax.f32 %v202_v52, 0.0 }
  0x9b   :  { %v304_v53 = vmul.f32 %v1451_v33, %v268_v50  ;;  %v319_v51 = vmul.f32 %v1451_v33, %v283_v48 }
  0x9c   :  { %v312_v14 = vmul.f32 %v1451_v33, %v276_v9 }
  0x9d   :  { %v343_v54 = vsel %vm333_vm2, %v304_v53, 0.0 }
  0x9e   :  { %344 = vadd.xlane.f32.xlu1 %v343_v54  ;;  %v367_v23 = vsel %vm333_vm2, %v312_v14, 0.0  ;;  %v317_v54 = vmul.f32 %v1451_v33, %v281_v44  ;;  %v290_v14 = vmax.f32 %v1472_v7, 0.0 }
  0xa0   :  { %v181_v55 = vpop.f32.mrf.mxu0  ;;  %v226_v15 = vpop.f32.mrf.mxu2  ;;  %v382_v58 = vsel %vm333_vm2, %v317_v54, 0.0  ;;  %v326_v21 = vmul.f32 %v1451_v33, %v290_v14 }
  0xa1   :  { %v269_v56 = vmax.f32 %v181_v55, 0.0  ;;  %v205_v59 = vpop.f32.mrf.mxu1  ;;  %v250_v40 = vpop.f32.mrf.mxu3  ;;  %v284_v55 = vmax.f32 %v226_v15, 0.0 }
  0xa2   :  { %v277_v25 = vmax.f32 %v205_v59, 0.0 }
  0xa3   :  { %v305_v57 = vmul.f32 %v1451_v33, %v269_v56  ;;  %v291_v56 = vmax.f32 %v247_v20, 0.0  ;;  %v320_v0 = vmul.f32 %v1451_v33, %v284_v55 }
  0xa4   :  { %v313_v30 = vmul.f32 %v1451_v33, %v277_v25 }
  0xa5   :  { %v346_v60 = vsel %vm333_vm2, %v305_v57, 0.0 }
  0xa6   :  { %347 = vadd.xlane.f32.xlu2 %v346_v60  ;;  %v370_v38 = vsel %vm333_vm2, %v313_v30, 0.0  ;;  %v388_v60 = vsel %vm333_vm2, %v319_v51, 0.0 }
  0xa8   :  { %v184_v62 = vpop.f32.mrf.mxu0  ;;  %v229_v32 = vpop.f32.mrf.mxu2 }
  0xa9   :  { %v270_v63 = vmax.f32 %v184_v62, 0.0  ;;  %v208_v4 = vpop.f32.mrf.mxu1  ;;  %v285_v47 = vmax.f32 %v229_v32, 0.0  ;;  %v253_v52 = vpop.f32.mrf.mxu3  ;;  %v1291_v32 = vmov 0  }
  0xaa   :  { %v278_v34 = vmax.f32 %v208_v4, 0.0  ;;  %v391_v4 = vsel %vm333_vm2, %v320_v0, 0.0  ;;  %1287 = vset.pattern.permute.xlu2 %v1291_v32  ;;  %1288 = vset.pattern.permute.xlu0 %v1291_v32 }
  0xab   :  { %v306_v1 = vmul.f32 %v1451_v33, %v270_v63  ;;  %v321_v53 = vmul.f32 %v1451_v33, %v285_v47  ;;  %v327_v63 = vmul.f32 %v1451_v33, %v291_v56  ;;  %1289 = vset.pattern.permute.xlu1 %v1291_v32 }
  0xac   :  { %v314_v42 = vmul.f32 %v1451_v33, %v278_v34 }
  0xad   :  { %v349_v2 = vsel %vm333_vm2, %v306_v1, 0.0  ;;  %v394_v57 = vsel %vm333_vm2, %v321_v53, 0.0  ;;  %v412_v3 = vsel %vm333_vm2, %v327_v63, 0.0 }
  0xae   :  { %350 = vadd.xlane.f32.xlu2 %v349_v2  ;;  %v373_v46 = vsel %vm333_vm2, %v314_v42, 0.0 }
  0xb0   :  { %v187_v6 = vpop.f32.mrf.mxu0  ;;  %v232_v50 = vpop.f32.mrf.mxu2 }
  0xb1   :  { %v271_v8 = vmax.f32 %v187_v6, 0.0  ;;  %v211_v17 = vpop.f32.mrf.mxu1  ;;  %v286_v59 = vmax.f32 %v232_v50, 0.0  ;;  %v256_v1 = vpop.f32.mrf.mxu3 }
  0xb2   :  { %v279_v24 = vmax.f32 %v211_v17, 0.0  ;;  %v294_v6 = vmax.f32 %v256_v1, 0.0 }
  0xb3   :  { %v307_v11 = vmul.f32 %v1451_v33, %v271_v8  ;;  %v322_v2 = vmul.f32 %v1451_v33, %v286_v59  ;;  %v289_v8 = vmax.f32 %v1465_v61, 0.0  ;;  %v292_v61 = vmax.f32 %v250_v40, 0.0 }
  0xb4   :  { %v315_v28 = vmul.f32 %v1451_v33, %v279_v24  ;;  %v409_v24 = vsel %vm333_vm2, %v326_v21, 0.0 }
  0xb5   :  { %v352_v13 = vsel %vm333_vm2, %v307_v11, 0.0  ;;  %v397_v9 = vsel %vm333_vm2, %v322_v2, 0.0 }
  0xb6   :  { %359 = vadd.xlane.f32.xlu2 %v358_v10  ;;  %353 = vadd.xlane.f32.xlu0 %v352_v13  ;;  %v376_v36 = vsel %vm333_vm2, %v315_v28, 0.0  ;;  %v330_v10 = vmul.f32 %v1451_v33, %v294_v6  ;;  %v325_v13 = vmul.f32 %v1451_v33, %v289_v8 }
  0xb8   :  { %v190_v16 = vpop.f32.mrf.mxu0  ;;  %v235_v62 = vpop.f32.mrf.mxu2  ;;  %v421_v15 = vsel %vm333_vm2, %v330_v10, 0.0  ;;  %v406_v18 = vsel %vm333_vm2, %v325_v13, 0.0 }
  0xb9   :  { %v272_v19 = vmax.f32 %v190_v16, 0.0  ;;  %v214_v31 = vpop.f32.mrf.mxu1  ;;  %v287_v5 = vmax.f32 %v235_v62, 0.0 }
  0xba   :  { %v280_v39 = vmax.f32 %v214_v31, 0.0 }
  0xbb   :  { %v308_v22 = vmul.f32 %v1451_v33, %v272_v19  ;;  %v323_v11 = vmul.f32 %v1451_v33, %v287_v5  ;;  %v259_v19 = vpop.f32.mrf.mxu3 }
  0xbc   :  { %v316_v43 = vmul.f32 %v1451_v33, %v280_v39  ;;  %v295_v25 = vmax.f32 %v259_v19, 0.0 }
  0xbd   :  { %v355_v27 = vsel %vm333_vm2, %v308_v22, 0.0  ;;  %v400_v16 = vsel %vm333_vm2, %v323_v11, 0.0  ;;  %v328_v22 = vmul.f32 %v1451_v33, %v292_v61 }
  0xbe   :  { %368 = vadd.xlane.f32.xlu2 %v367_v23  ;;  %356 = vadd.xlane.f32.xlu1 %v355_v27  ;;  %v379_v49 = vsel %vm333_vm2, %v316_v43, 0.0  ;;  %v293_v23 = vmax.f32 %v253_v52, 0.0  ;;  %v331_v29 = vmul.f32 %v1451_v33, %v295_v25 }
  0xbf   :  { %362 = vadd.xlane.f32.xlu0 %v361_v26  ;;  %v415_v26 = vsel %vm333_vm2, %v328_v22, 0.0 }
  0xc0   :  { %v238_v12 = vpop.f32.mrf.mxu2  ;;  %v329_v27 = vmul.f32 %v1451_v33, %v293_v23  ;;  %v424_v34 = vsel %vm333_vm2, %v331_v29, 0.0 }
  0xc1   :  { %v288_v17 = vmax.f32 %v238_v12, 0.0 }
  0xc2   :  { %v418_v30 = vsel %vm333_vm2, %v329_v27, 0.0 }
  0xc3   :  { %v324_v20 = vmul.f32 %v1451_v33, %v288_v17  ;;  %v262_v28 = vpop.f32.mrf.mxu3 }
  0xc4   :  { %v296_v31 = vmax.f32 %v262_v28, 0.0 }
  0xc5   :  { %v403_v7 = vsel %vm333_vm2, %v324_v20, 0.0 }
  0xc6   :  { %377 = vadd.xlane.f32.xlu2 %v376_v36  ;;  %365 = vadd.xlane.f32.xlu1 %v364_v37  ;;  %v332_v35 = vmul.f32 %v1451_v33, %v296_v31  ;;  %v1531_v36 = vstv %s1685_s3 }
  0xc7   :  { %371 = vadd.xlane.f32.xlu0 %v370_v38 }
  0xc8   :  { %v427_v39 = vsel %vm333_vm2, %v332_v35, 0.0  ;;  %vm1238_vm2 = vcmask 1040384  }
  0xce   :  { %386 = vadd.xlane.f32.xlu2 %v385_v45  ;;  %374 = vadd.xlane.f32.xlu1 %v373_v46 }
  0xcf   :  { %380 = vadd.xlane.f32.xlu0 %v379_v49 }
  0xd6   :  { %395 = vadd.xlane.f32.xlu2 %v394_v57  ;;  %383 = vadd.xlane.f32.xlu1 %v382_v58 }
  0xd7   :  { %389 = vadd.xlane.f32.xlu0 %v388_v60 }
  0xde   :  { %413 = vadd.xlane.f32.xlu2 %v412_v3  ;;  %392 = vadd.xlane.f32.xlu1 %v391_v4 }
  0xdf   :  { %398 = vadd.xlane.f32.xlu0 %v397_v9 }
  0xe6   :  { %422 = vadd.xlane.f32.xlu2 %v421_v15  ;;  %401 = vadd.xlane.f32.xlu1 %v400_v16 }
  0xe7   :  { %407 = vadd.xlane.f32.xlu0 %v406_v18 }
  0xee   :  { %404 = vadd.xlane.f32.xlu2 %v403_v7  ;;  %410 = vadd.xlane.f32.xlu1 %v409_v24 }
  0xef   :  { %416 = vadd.xlane.f32.xlu0 %v415_v26 }
  0xf6   :  { %419 = vadd.xlane.f32.xlu1 %v418_v30 }
  0xf7   :  { %425 = vadd.xlane.f32.xlu0 %v424_v34 }
  0xf9   :  { %v336_v37 = vpop.xlane.xlu0 %335 }
  0xfa   :  { %v432_v38 = vadd.f32 %v1531_v36, %v336_v37 }
  0xfc   :  { %v496_v40 = vperm.slane %v432_v38, 0  ;;  %v497_v41 = vperm.slane %v432_v38, 1  ;;  %v498_v42 = vperm.slane %v432_v38, 2  ;;  %v499_v43 = vperm.slane %v432_v38, 3 }
  0xfd   :  { %v500_v44 = vperm.slane %v432_v38, 4  ;;  %v501_v45 = vperm.slane %v432_v38, 5  ;;  %v502_v33 = vperm.slane %v432_v38, 6  ;;  %v503_v46 = vperm.slane %v432_v38, 7 }
  0xfe   :  { %752 = vst [vmem:[#allocation1] ss:$9 sm:$0xff] %v496_v40  ;;  %428 = vadd.xlane.f32.xlu1 %v427_v39 }
  0xff   :  { %754 = vst [vmem:[#allocation1 + $0x1] ss:$9 sm:$0xff] %v497_v41 }
 0x100   :  { %756 = vst [vmem:[#allocation1 + $0x2] ss:$9 sm:$0xff] %v498_v42 }
 0x101   :  { %758 = vst [vmem:[#allocation1 + $0x3] ss:$9 sm:$0xff] %v499_v43  ;;  %v339_v47 = vpop.xlane.xlu0 %338 }
 0x102   :  { %760 = vst [vmem:[#allocation1 + $0x4] ss:$9 sm:$0xff] %v500_v44  ;;  %v433_v48 = vadd.f32 %v1531_v36, %v339_v47 }
 0x103   :  { %762 = vst [vmem:[#allocation1 + $0x5] ss:$9 sm:$0xff] %v501_v45 }
 0x104   :  { %764 = vst [vmem:[#allocation1 + $0x6] ss:$9 sm:$0xff] %v502_v33  ;;  %v504_v49 = vperm.slane %v433_v48, 0  ;;  %v505_v50 = vperm.slane %v433_v48, 1  ;;  %v506_v52 = vperm.slane %v433_v48, 2  ;;  %v507_v54 = vperm.slane %v433_v48, 3 }
 0x105   :  { %766 = vst [vmem:[#allocation1 + $0x7] ss:$9 sm:$0xff] %v503_v46  ;;  %v508_v51 = vperm.slane %v433_v48, 4  ;;  %v509_v55 = vperm.slane %v433_v48, 5  ;;  %v510_v56 = vperm.slane %v433_v48, 6  ;;  %v511_v57 = vperm.slane %v433_v48, 7 }
 0x109   :  { %v342_v58 = vpop.xlane.xlu1 %341 }
 0x10a   :  { %v434_v59 = vadd.f32 %v1531_v36, %v342_v58 }
 0x10c   :  { %v767_v53 = vld [vmem:[#allocation1] sm:$0xff]  ;;  %v512_v60 = vperm.slane %v434_v59, 0  ;;  %v513_v62 = vperm.slane %v434_v59, 1  ;;  %v514_v63 = vperm.slane %v434_v59, 2  ;;  %v515_v1 = vperm.slane %v434_v59, 3 }
 0x10d   :  { %768 = vst [vmem:[#allocation1] ss:$9 sm:$0xff] %v504_v49  ;;  %1048 = vperm.xlu2 %1287, %v767_v53   ;;  %v516_v2 = vperm.slane %v434_v59, 4  ;;  %v517_v3 = vperm.slane %v434_v59, 5  ;;  %v518_v4 = vperm.slane %v434_v59, 6  ;;  %v519_v5 = vperm.slane %v434_v59, 7 }
 0x10e   :  { %769 = vst [vmem:[#allocation1 + $0x1] ss:$9 sm:$0xff] %v505_v50 }
 0x10f   :  { %770 = vst [vmem:[#allocation1 + $0x2] ss:$9 sm:$0xff] %v506_v52 }
 0x110   :  { %771 = vst [vmem:[#allocation1 + $0x3] ss:$9 sm:$0xff] %v507_v54 }
 0x111   :  { %772 = vst [vmem:[#allocation1 + $0x4] ss:$9 sm:$0xff] %v508_v51  ;;  %v345_v6 = vpop.xlane.xlu1 %344 }
 0x112   :  { %773 = vst [vmem:[#allocation1 + $0x5] ss:$9 sm:$0xff] %v509_v55  ;;  %v435_v8 = vadd.f32 %v1531_v36, %v345_v6 }
 0x113   :  { %774 = vst [vmem:[#allocation1 + $0x6] ss:$9 sm:$0xff] %v510_v56 }
 0x114   :  { %775 = vst [vmem:[#allocation1 + $0x7] ss:$9 sm:$0xff] %v511_v57  ;;  %v520_v9 = vperm.slane %v435_v8, 0  ;;  %v521_v10 = vperm.slane %v435_v8, 1  ;;  %v522_v11 = vperm.slane %v435_v8, 2  ;;  %v523_v13 = vperm.slane %v435_v8, 3 }
 0x115   :  { %v524_v14 = vperm.slane %v435_v8, 4  ;;  %v525_v15 = vperm.slane %v435_v8, 5  ;;  %v526_v16 = vperm.slane %v435_v8, 6  ;;  %v527_v17 = vperm.slane %v435_v8, 7 }
 0x119   :  { %v348_v61 = vpop.xlane.xlu2 %347 }
 0x11a   :  { %v436_v18 = vadd.f32 %v1531_v36, %v348_v61 }
 0x11b   :  { %v776_v0 = vld [vmem:[#allocation1] sm:$0xff] }
 0x11c   :  { %777 = vst [vmem:[#allocation1] ss:$9 sm:$0xff] %v512_v60  ;;  %1051 = vperm.xlu0 %1288, %v776_v0   ;;  %v528_v19 = vperm.slane %v436_v18, 0  ;;  %v529_v20 = vperm.slane %v436_v18, 1  ;;  %v530_v21 = vperm.slane %v436_v18, 2  ;;  %v531_v23 = vperm.slane %v436_v18, 3 }
 0x11d   :  { %778 = vst [vmem:[#allocation1 + $0x1] ss:$9 sm:$0xff] %v513_v62  ;;  %v532_v7 = vperm.slane %v436_v18, 4  ;;  %v533_v24 = vperm.slane %v436_v18, 5  ;;  %v534_v25 = vperm.slane %v436_v18, 6  ;;  %v535_v26 = vperm.slane %v436_v18, 7 }
 0x11e   :  { %779 = vst [vmem:[#allocation1 + $0x2] ss:$9 sm:$0xff] %v514_v63 }
 0x11f   :  { %780 = vst [vmem:[#allocation1 + $0x3] ss:$9 sm:$0xff] %v515_v1 }
 0x120   :  { %781 = vst [vmem:[#allocation1 + $0x4] ss:$9 sm:$0xff] %v516_v2 }
 0x121   :  { %782 = vst [vmem:[#allocation1 + $0x5] ss:$9 sm:$0xff] %v517_v3  ;;  %v351_v27 = vpop.xlane.xlu2 %350 }
 0x122   :  { %783 = vst [vmem:[#allocation1 + $0x6] ss:$9 sm:$0xff] %v518_v4  ;;  %v437_v28 = vadd.f32 %v1531_v36, %v351_v27 }
 0x123   :  { %784 = vst [vmem:[#allocation1 + $0x7] ss:$9 sm:$0xff] %v519_v5 }
 0x124   :  { %v536_v29 = vperm.slane %v437_v28, 0  ;;  %v537_v30 = vperm.slane %v437_v28, 1  ;;  %v538_v31 = vperm.slane %v437_v28, 2  ;;  %v539_v34 = vperm.slane %v437_v28, 3 }
 0x125   :  { %v540_v35 = vperm.slane %v437_v28, 4  ;;  %v541_v37 = vperm.slane %v437_v28, 5  ;;  %v542_v38 = vperm.slane %v437_v28, 6  ;;  %v543_v39 = vperm.slane %v437_v28, 7 }
 0x129   :  { %v354_v40 = vpop.xlane.xlu0 %353  ;;  %v360_v62 = vpop.xlane.xlu2 %359 }
 0x12a   :  { %v785_v12 = vld [vmem:[#allocation1] sm:$0xff]  ;;  %v438_v41 = vadd.f32 %v1531_v36, %v354_v40  ;;  %v440_v63 = vadd.f32 %v1531_v36, %v360_v62 }
 0x12b   :  { %786 = vst [vmem:[#allocation1] ss:$9 sm:$0xff] %v520_v9  ;;  %1054 = vperm.xlu1 %1289, %v785_v12  }
 0x12c   :  { %787 = vst [vmem:[#allocation1 + $0x1] ss:$9 sm:$0xff] %v521_v10  ;;  %v544_v42 = vperm.slane %v438_v41, 0  ;;  %v545_v43 = vperm.slane %v438_v41, 1  ;;  %v546_v44 = vperm.slane %v438_v41, 2  ;;  %v547_v33 = vperm.slane %v438_v41, 3 }
 0x12d   :  { %788 = vst [vmem:[#allocation1 + $0x2] ss:$9 sm:$0xff] %v522_v11  ;;  %v548_v46 = vperm.slane %v438_v41, 4  ;;  %v549_v47 = vperm.slane %v438_v41, 5  ;;  %v550_v48 = vperm.slane %v438_v41, 6  ;;  %v551_v49 = vperm.slane %v438_v41, 7 }
 0x12e   :  { %789 = vst [vmem:[#allocation1 + $0x3] ss:$9 sm:$0xff] %v523_v13  ;;  %v560_v0 = vperm.slane %v440_v63, 0  ;;  %v561_v1 = vperm.slane %v440_v63, 1  ;;  %v562_v2 = vperm.slane %v440_v63, 2  ;;  %v563_v3 = vperm.slane %v440_v63, 3 }
 0x12f   :  { %790 = vst [vmem:[#allocation1 + $0x4] ss:$9 sm:$0xff] %v524_v14  ;;  %v564_v5 = vperm.slane %v440_v63, 4  ;;  %v565_v6 = vperm.slane %v440_v63, 5  ;;  %v566_v8 = vperm.slane %v440_v63, 6  ;;  %v567_v9 = vperm.slane %v440_v63, 7 }
 0x130   :  { %791 = vst [vmem:[#allocation1 + $0x5] ss:$9 sm:$0xff] %v525_v15 }
 0x131   :  { %792 = vst [vmem:[#allocation1 + $0x6] ss:$9 sm:$0xff] %v526_v16  ;;  %v357_v50 = vpop.xlane.xlu1 %356 }
 0x132   :  { %793 = vst [vmem:[#allocation1 + $0x7] ss:$9 sm:$0xff] %v527_v17  ;;  %v439_v52 = vadd.f32 %v1531_v36, %v357_v50  ;;  %v363_v10 = vpop.xlane.xlu0 %362 }
 0x133   :  { %v441_v11 = vadd.f32 %v1531_v36, %v363_v10 }
 0x134   :  { %v552_v53 = vperm.slane %v439_v52, 0  ;;  %v553_v54 = vperm.slane %v439_v52, 1  ;;  %v554_v51 = vperm.slane %v439_v52, 2  ;;  %v555_v56 = vperm.slane %v439_v52, 3 }
 0x135   :  { %v556_v57 = vperm.slane %v439_v52, 4  ;;  %v557_v58 = vperm.slane %v439_v52, 5  ;;  %v558_v59 = vperm.slane %v439_v52, 6  ;;  %v559_v60 = vperm.slane %v439_v52, 7 }
 0x136   :  { %v568_v12 = vperm.slane %v441_v11, 0  ;;  %v569_v13 = vperm.slane %v441_v11, 1  ;;  %v570_v14 = vperm.slane %v441_v11, 2  ;;  %v571_v16 = vperm.slane %v441_v11, 3 }
 0x137   :  { %v572_v17 = vperm.slane %v441_v11, 4  ;;  %v573_v61 = vperm.slane %v441_v11, 5  ;;  %v574_v18 = vperm.slane %v441_v11, 6 }
 0x139   :  { %v794_v22 = vld [vmem:[#allocation1] sm:$0xff] }
 0x13a   :  { %795 = vst [vmem:[#allocation1] ss:$9 sm:$0xff] %v528_v19  ;;  %1057 = vperm.xlu2 %1287, %v794_v22   ;;  %v575_v19 = vperm.slane %v441_v11, 7 }
 0x13b   :  { %796 = vst [vmem:[#allocation1 + $0x1] ss:$9 sm:$0xff] %v529_v20  ;;  %v366_v20 = vpop.xlane.xlu1 %365 }
 0x13c   :  { %797 = vst [vmem:[#allocation1 + $0x2] ss:$9 sm:$0xff] %v530_v21  ;;  %v442_v21 = vadd.f32 %v1531_v36, %v366_v20 }
 0x13d   :  { %798 = vst [vmem:[#allocation1 + $0x3] ss:$9 sm:$0xff] %v531_v23 }
 0x13e   :  { %799 = vst [vmem:[#allocation1 + $0x4] ss:$9 sm:$0xff] %v532_v7  ;;  %v576_v22 = vperm.slane %v442_v21, 0  ;;  %v577_v23 = vperm.slane %v442_v21, 1  ;;  %v578_v7 = vperm.slane %v442_v21, 2  ;;  %v581_v27 = vperm.slane %v442_v21, 5 }
 0x13f   :  { %800 = vst [vmem:[#allocation1 + $0x5] ss:$9 sm:$0xff] %v533_v24  ;;  %v582_v28 = vperm.slane %v442_v21, 6 }
 0x140   :  { %801 = vst [vmem:[#allocation1 + $0x6] ss:$9 sm:$0xff] %v534_v25  ;;  %v579_v25 = vperm.slane %v442_v21, 3 }
 0x141   :  { %802 = vst [vmem:[#allocation1 + $0x7] ss:$9 sm:$0xff] %v535_v26  ;;  %v580_v26 = vperm.slane %v442_v21, 4 }
 0x148   :  { %v803_v32 = vld [vmem:[#allocation1] sm:$0xff] }
 0x149   :  { %804 = vst [vmem:[#allocation1] ss:$9 sm:$0xff] %v536_v29  ;;  %1060 = vperm.xlu2 %1287, %v803_v32   ;;  %v583_v29 = vperm.slane %v442_v21, 7 }
 0x14a   :  { %805 = vst [vmem:[#allocation1 + $0x1] ss:$9 sm:$0xff] %v537_v30  ;;  %v369_v30 = vpop.xlane.xlu2 %368 }
 0x14b   :  { %806 = vst [vmem:[#allocation1 + $0x2] ss:$9 sm:$0xff] %v538_v31  ;;  %v443_v31 = vadd.f32 %v1531_v36, %v369_v30 }
 0x14c   :  { %807 = vst [vmem:[#allocation1 + $0x3] ss:$9 sm:$0xff] %v539_v34 }
 0x14d   :  { %808 = vst [vmem:[#allocation1 + $0x4] ss:$9 sm:$0xff] %v540_v35  ;;  %v584_v32 = vperm.slane %v443_v31, 0  ;;  %v585_v34 = vperm.slane %v443_v31, 1  ;;  %v586_v35 = vperm.slane %v443_v31, 2  ;;  %v589_v40 = vperm.slane %v443_v31, 5 }
 0x14e   :  { %809 = vst [vmem:[#allocation1 + $0x5] ss:$9 sm:$0xff] %v541_v37  ;;  %v587_v37 = vperm.slane %v443_v31, 3  ;;  %v590_v41 = vperm.slane %v443_v31, 6 }
 0x14f   :  { %810 = vst [vmem:[#allocation1 + $0x6] ss:$9 sm:$0xff] %v542_v38 }
 0x150   :  { %811 = vst [vmem:[#allocation1 + $0x7] ss:$9 sm:$0xff] %v543_v39  ;;  %v588_v39 = vperm.slane %v443_v31, 4 }
 0x157   :  { %v812_v45 = vld [vmem:[#allocation1] sm:$0xff] }
 0x158   :  { %813 = vst [vmem:[#allocation1] ss:$9 sm:$0xff] %v544_v42  ;;  %1063 = vperm.xlu1 %1289, %v812_v45   ;;  %v591_v42 = vperm.slane %v443_v31, 7 }
 0x159   :  { %814 = vst [vmem:[#allocation1 + $0x1] ss:$9 sm:$0xff] %v545_v43  ;;  %v372_v43 = vpop.xlane.xlu0 %371 }
 0x15a   :  { %815 = vst [vmem:[#allocation1 + $0x2] ss:$9 sm:$0xff] %v546_v44  ;;  %v444_v44 = vadd.f32 %v1531_v36, %v372_v43 }
 0x15b   :  { %816 = vst [vmem:[#allocation1 + $0x3] ss:$9 sm:$0xff] %v547_v33 }
 0x15c   :  { %817 = vst [vmem:[#allocation1 + $0x4] ss:$9 sm:$0xff] %v548_v46  ;;  %v592_v45 = vperm.slane %v444_v44, 0  ;;  %v593_v33 = vperm.slane %v444_v44, 1  ;;  %v594_v46 = vperm.slane %v444_v44, 2  ;;  %v597_v50 = vperm.slane %v444_v44, 5 }
 0x15d   :  { %818 = vst [vmem:[#allocation1 + $0x5] ss:$9 sm:$0xff] %v549_v47  ;;  %v595_v47 = vperm.slane %v444_v44, 3  ;;  %v598_v52 = vperm.slane %v444_v44, 6 }
 0x15e   :  { %819 = vst [vmem:[#allocation1 + $0x6] ss:$9 sm:$0xff] %v550_v48 }
 0x15f   :  { %820 = vst [vmem:[#allocation1 + $0x7] ss:$9 sm:$0xff] %v551_v49  ;;  %v596_v49 = vperm.slane %v444_v44, 4 }
 0x166   :  { %v821_v55 = vld [vmem:[#allocation1] sm:$0xff] }
 0x167   :  { %822 = vst [vmem:[#allocation1] ss:$9 sm:$0xff] %v552_v53  ;;  %1066 = vperm.xlu2 %1287, %v821_v55   ;;  %v599_v53 = vperm.slane %v444_v44, 7 }
 0x168   :  { %823 = vst [vmem:[#allocation1 + $0x1] ss:$9 sm:$0xff] %v553_v54  ;;  %v375_v54 = vpop.xlane.xlu1 %374 }
 0x169   :  { %824 = vst [vmem:[#allocation1 + $0x2] ss:$9 sm:$0xff] %v554_v51  ;;  %v445_v51 = vadd.f32 %v1531_v36, %v375_v54 }
 0x16a   :  { %825 = vst [vmem:[#allocation1 + $0x3] ss:$9 sm:$0xff] %v555_v56 }
 0x16b   :  { %826 = vst [vmem:[#allocation1 + $0x4] ss:$9 sm:$0xff] %v556_v57  ;;  %v600_v55 = vperm.slane %v445_v51, 0  ;;  %v601_v56 = vperm.slane %v445_v51, 1  ;;  %v602_v57 = vperm.slane %v445_v51, 2  ;;  %v605_v62 = vperm.slane %v445_v51, 5 }
 0x16c   :  { %827 = vst [vmem:[#allocation1 + $0x5] ss:$9 sm:$0xff] %v557_v58  ;;  %v606_v63 = vperm.slane %v445_v51, 6 }
 0x16d   :  { %828 = vst [vmem:[#allocation1 + $0x6] ss:$9 sm:$0xff] %v558_v59  ;;  %v603_v59 = vperm.slane %v445_v51, 3 }
 0x16e   :  { %829 = vst [vmem:[#allocation1 + $0x7] ss:$9 sm:$0xff] %v559_v60  ;;  %v604_v60 = vperm.slane %v445_v51, 4 }
 0x175   :  { %v830_v4 = vld [vmem:[#allocation1] sm:$0xff] }
 0x176   :  { %831 = vst [vmem:[#allocation1] ss:$9 sm:$0xff] %v560_v0  ;;  %1069 = vperm.xlu1 %1289, %v830_v4   ;;  %v607_v0 = vperm.slane %v445_v51, 7 }
 0x177   :  { %832 = vst [vmem:[#allocation1 + $0x1] ss:$9 sm:$0xff] %v561_v1  ;;  %v378_v1 = vpop.xlane.xlu2 %377 }
 0x178   :  { %833 = vst [vmem:[#allocation1 + $0x2] ss:$9 sm:$0xff] %v562_v2  ;;  %v446_v2 = vadd.f32 %v1531_v36, %v378_v1 }
 0x179   :  { %834 = vst [vmem:[#allocation1 + $0x3] ss:$9 sm:$0xff] %v563_v3 }
 0x17a   :  { %835 = vst [vmem:[#allocation1 + $0x4] ss:$9 sm:$0xff] %v564_v5  ;;  %v608_v3 = vperm.slane %v446_v2, 0  ;;  %v609_v4 = vperm.slane %v446_v2, 1  ;;  %v610_v5 = vperm.slane %v446_v2, 2  ;;  %v613_v10 = vperm.slane %v446_v2, 5 }
 0x17b   :  { %836 = vst [vmem:[#allocation1 + $0x5] ss:$9 sm:$0xff] %v565_v6  ;;  %v611_v6 = vperm.slane %v446_v2, 3  ;;  %v614_v11 = vperm.slane %v446_v2, 6 }
 0x17c   :  { %837 = vst [vmem:[#allocation1 + $0x6] ss:$9 sm:$0xff] %v566_v8 }
 0x17d   :  { %838 = vst [vmem:[#allocation1 + $0x7] ss:$9 sm:$0xff] %v567_v9  ;;  %v612_v9 = vperm.slane %v446_v2, 4 }
 0x184   :  { %v839_v15 = vld [vmem:[#allocation1] sm:$0xff] }
 0x185   :  { %840 = vst [vmem:[#allocation1] ss:$9 sm:$0xff] %v568_v12  ;;  %1072 = vperm.xlu0 %1288, %v839_v15   ;;  %v615_v12 = vperm.slane %v446_v2, 7 }
 0x186   :  { %841 = vst [vmem:[#allocation1 + $0x1] ss:$9 sm:$0xff] %v569_v13  ;;  %v381_v13 = vpop.xlane.xlu0 %380 }
 0x187   :  { %842 = vst [vmem:[#allocation1 + $0x2] ss:$9 sm:$0xff] %v570_v14  ;;  %v447_v14 = vadd.f32 %v1531_v36, %v381_v13 }
 0x188   :  { %843 = vst [vmem:[#allocation1 + $0x3] ss:$9 sm:$0xff] %v571_v16 }
 0x189   :  { %844 = vst [vmem:[#allocation1 + $0x4] ss:$9 sm:$0xff] %v572_v17  ;;  %v616_v15 = vperm.slane %v447_v14, 0  ;;  %v617_v16 = vperm.slane %v447_v14, 1  ;;  %v618_v17 = vperm.slane %v447_v14, 2  ;;  %v621_v20 = vperm.slane %v447_v14, 5 }
 0x18a   :  { %845 = vst [vmem:[#allocation1 + $0x5] ss:$9 sm:$0xff] %v573_v61  ;;  %v619_v61 = vperm.slane %v447_v14, 3  ;;  %v622_v21 = vperm.slane %v447_v14, 6 }
 0x18b   :  { %846 = vst [vmem:[#allocation1 + $0x6] ss:$9 sm:$0xff] %v574_v18 }
 0x18c   :  { %847 = vst [vmem:[#allocation1 + $0x7] ss:$9 sm:$0xff] %v575_v19  ;;  %v620_v19 = vperm.slane %v447_v14, 4 }
 0x193   :  { %v848_v24 = vld [vmem:[#allocation1] sm:$0xff] }
 0x194   :  { %849 = vst [vmem:[#allocation1] ss:$9 sm:$0xff] %v576_v22  ;;  %1075 = vperm.xlu2 %1287, %v848_v24   ;;  %v623_v22 = vperm.slane %v447_v14, 7  ;;  %v1143_v14 = vlaneseq }
 0x195   :  { %850 = vst [vmem:[#allocation1 + $0x1] ss:$9 sm:$0xff] %v577_v23  ;;  %v387_v23 = vpop.xlane.xlu2 %386 }
 0x196   :  { %851 = vst [vmem:[#allocation1 + $0x2] ss:$9 sm:$0xff] %v578_v7  ;;  %v384_v7 = vpop.xlane.xlu1 %383 }
 0x197   :  { %852 = vst [vmem:[#allocation1 + $0x3] ss:$9 sm:$0xff] %v579_v25  ;;  %v448_v24 = vadd.f32 %v1531_v36, %v384_v7 }
 0x198   :  { %853 = vst [vmem:[#allocation1 + $0x4] ss:$9 sm:$0xff] %v580_v26 }
 0x199   :  { %854 = vst [vmem:[#allocation1 + $0x5] ss:$9 sm:$0xff] %v581_v27  ;;  %v624_v25 = vperm.slane %v448_v24, 0  ;;  %v625_v26 = vperm.slane %v448_v24, 1  ;;  %v626_v27 = vperm.slane %v448_v24, 2  ;;  %v628_v30 = vperm.slane %v448_v24, 4 }
 0x19a   :  { %855 = vst [vmem:[#allocation1 + $0x6] ss:$9 sm:$0xff] %v582_v28 }
 0x19b   :  { %856 = vst [vmem:[#allocation1 + $0x7] ss:$9 sm:$0xff] %v583_v29  ;;  %v627_v29 = vperm.slane %v448_v24, 3 }
 0x19d   :  { %v1551_v31 = vpop.xlane.xlu2 %395 }
 0x1a2   :  { %v857_v38 = vld [vmem:[#allocation1] sm:$0xff] }
 0x1a3   :  { %858 = vst [vmem:[#allocation1] ss:$9 sm:$0xff] %v584_v32  ;;  %1078 = vperm.xlu1 %1289, %v857_v38   ;;  %v629_v32 = vperm.slane %v448_v24, 5  ;;  %v449_v38 = vadd.f32 %v1531_v36, %v387_v23 }
 0x1a4   :  { %859 = vst [vmem:[#allocation1 + $0x1] ss:$9 sm:$0xff] %v585_v34  ;;  %v390_v34 = vpop.xlane.xlu0 %389 }
 0x1a5   :  { %860 = vst [vmem:[#allocation1 + $0x2] ss:$9 sm:$0xff] %v586_v35  ;;  %v630_v35 = vperm.slane %v448_v24, 6  ;;  %v634_v44 = vperm.slane %v449_v38, 2 }
 0x1a6   :  { %861 = vst [vmem:[#allocation1 + $0x3] ss:$9 sm:$0xff] %v587_v37  ;;  %v631_v37 = vperm.slane %v448_v24, 7 }
 0x1a7   :  { %862 = vst [vmem:[#allocation1 + $0x4] ss:$9 sm:$0xff] %v588_v39  ;;  %v393_v39 = vpop.xlane.xlu1 %392 }
 0x1a8   :  { %863 = vst [vmem:[#allocation1 + $0x5] ss:$9 sm:$0xff] %v589_v40  ;;  %v632_v40 = vperm.slane %v449_v38, 0 }
 0x1a9   :  { %864 = vst [vmem:[#allocation1 + $0x6] ss:$9 sm:$0xff] %v590_v41  ;;  %v1554_v41 = vpop.xlane.xlu2 %413 }
 0x1aa   :  { %865 = vst [vmem:[#allocation1 + $0x7] ss:$9 sm:$0xff] %v591_v42  ;;  %v633_v42 = vperm.slane %v449_v38, 1 }
 0x1ac   :  { %v1556_v43 = vpop.xlane.xlu0 %398 }
 0x1b1   :  { %v866_v48 = vld [vmem:[#allocation1] sm:$0xff] }
 0x1b2   :  { %867 = vst [vmem:[#allocation1] ss:$9 sm:$0xff] %v592_v45  ;;  %1081 = vperm.xlu0 %1288, %v866_v48   ;;  %v635_v45 = vperm.slane %v449_v38, 3  ;;  %v638_v48 = vperm.slane %v449_v38, 6 }
 0x1b3   :  { %868 = vst [vmem:[#allocation1 + $0x1] ss:$9 sm:$0xff] %v593_v33 }
 0x1b4   :  { %869 = vst [vmem:[#allocation1 + $0x2] ss:$9 sm:$0xff] %v594_v46  ;;  %v636_v46 = vperm.slane %v449_v38, 4  ;;  %v1563_v54 = vpop.xlane.xlu0 %407 }
 0x1b5   :  { %870 = vst [vmem:[#allocation1 + $0x3] ss:$9 sm:$0xff] %v595_v47  ;;  %v637_v47 = vperm.slane %v449_v38, 5 }
 0x1b6   :  { %871 = vst [vmem:[#allocation1 + $0x4] ss:$9 sm:$0xff] %v596_v49  ;;  %v639_v49 = vperm.slane %v449_v38, 7 }
 0x1b7   :  { %872 = vst [vmem:[#allocation1 + $0x5] ss:$9 sm:$0xff] %v597_v50  ;;  %v1558_v50 = vpop.xlane.xlu1 %401 }
 0x1b8   :  { %873 = vst [vmem:[#allocation1 + $0x6] ss:$9 sm:$0xff] %v598_v52  ;;  %v1560_v52 = vpop.xlane.xlu2 %422 }
 0x1b9   :  { %874 = vst [vmem:[#allocation1 + $0x7] ss:$9 sm:$0xff] %v599_v53  ;;  %v450_v53 = vadd.f32 %v1531_v36, %v390_v34 }
 0x1bb   :  { %v640_v51 = vperm.slane %v450_v53, 0  ;;  %v647_v2 = vperm.slane %v450_v53, 7 }
 0x1bc   :  { %v1569_v1 = vpop.xlane.xlu0 %416 }
 0x1c0   :  { %v875_v58 = vld [vmem:[#allocation1] sm:$0xff] }
 0x1c1   :  { %876 = vst [vmem:[#allocation1] ss:$9 sm:$0xff] %v600_v55  ;;  %1084 = vperm.xlu2 %1287, %v875_v58   ;;  %v641_v55 = vperm.slane %v450_v53, 1 }
 0x1c2   :  { %877 = vst [vmem:[#allocation1 + $0x1] ss:$9 sm:$0xff] %v601_v56  ;;  %v642_v56 = vperm.slane %v450_v53, 2 }
 0x1c3   :  { %878 = vst [vmem:[#allocation1 + $0x2] ss:$9 sm:$0xff] %v602_v57  ;;  %v643_v57 = vperm.slane %v450_v53, 3 }
 0x1c4   :  { %879 = vst [vmem:[#allocation1 + $0x3] ss:$9 sm:$0xff] %v603_v59  ;;  %v644_v59 = vperm.slane %v450_v53, 4 }
 0x1c5   :  { %880 = vst [vmem:[#allocation1 + $0x4] ss:$9 sm:$0xff] %v604_v60  ;;  %v1565_v60 = vpop.xlane.xlu1 %410 }
 0x1c6   :  { %881 = vst [vmem:[#allocation1 + $0x5] ss:$9 sm:$0xff] %v605_v62  ;;  %v645_v62 = vperm.slane %v450_v53, 5 }
 0x1c7   :  { %882 = vst [vmem:[#allocation1 + $0x6] ss:$9 sm:$0xff] %v606_v63  ;;  %v1567_v63 = vpop.xlane.xlu2 %404 }
 0x1c8   :  { %883 = vst [vmem:[#allocation1 + $0x7] ss:$9 sm:$0xff] %v607_v0  ;;  %v646_v0 = vperm.slane %v450_v53, 6 }
 0x1cf   :  { %v884_v8 = vld [vmem:[#allocation1] sm:$0xff] }
 0x1d0   :  { %885 = vst [vmem:[#allocation1] ss:$9 sm:$0xff] %v608_v3  ;;  %1087 = vperm.xlu1 %1289, %v884_v8   ;;  %v451_v3 = vadd.f32 %v1531_v36, %v393_v39 }
 0x1d1   :  { %886 = vst [vmem:[#allocation1 + $0x1] ss:$9 sm:$0xff] %v609_v4  ;;  %v1572_v4 = vpop.xlane.xlu1 %419 }
 0x1d2   :  { %887 = vst [vmem:[#allocation1 + $0x2] ss:$9 sm:$0xff] %v610_v5  ;;  %v648_v5 = vperm.slane %v451_v3, 0  ;;  %v649_v8 = vperm.slane %v451_v3, 1  ;;  %v652_v13 = vperm.slane %v451_v3, 4 }
 0x1d3   :  { %888 = vst [vmem:[#allocation1 + $0x3] ss:$9 sm:$0xff] %v611_v6  ;;  %v1049_v6 = vpop.permute.xlu2 %1048 }
 0x1d4   :  { %889 = vst [vmem:[#allocation1 + $0x4] ss:$9 sm:$0xff] %v612_v9  ;;  %v1574_v9 = vpop.xlane.xlu0 %425 }
 0x1d5   :  { %890 = vst [vmem:[#allocation1 + $0x5] ss:$9 sm:$0xff] %v613_v10  ;;  %v650_v10 = vperm.slane %v451_v3, 2 }
 0x1d6   :  { %891 = vst [vmem:[#allocation1 + $0x6] ss:$9 sm:$0xff] %v614_v11 }
 0x1d7   :  { %892 = vst [vmem:[#allocation1 + $0x7] ss:$9 sm:$0xff] %v615_v12  ;;  %v651_v12 = vperm.slane %v451_v3, 3 }
 0x1de   :  { %v893_v18 = vld [vmem:[#allocation1] sm:$0xff] }
 0x1df   :  { %894 = vst [vmem:[#allocation1] ss:$9 sm:$0xff] %v616_v15  ;;  %1090 = vperm.xlu0 %1288, %v893_v18   ;;  %v653_v15 = vperm.slane %v451_v3, 5  ;;  %v1579_v18 = vand.u32 127, %v1143_v14 }
 0x1e0   :  { %895 = vst [vmem:[#allocation1 + $0x1] ss:$9 sm:$0xff] %v617_v16  ;;  %v654_v16 = vperm.slane %v451_v3, 6 }
 0x1e1   :  { %896 = vst [vmem:[#allocation1 + $0x2] ss:$9 sm:$0xff] %v618_v17  ;;  %v655_v17 = vperm.slane %v451_v3, 7  ;;  %v1588_v7 = vadd.s32 4294967280, %v1579_v18  ;;  %v454_v3 = vadd.f32 %v1531_v36, %v1558_v50  ;;  %v455_v50 = vadd.f32 %v1531_v36, %v1567_v63 }
 0x1e2   :  { %897 = vst [vmem:[#allocation1 + $0x3] ss:$9 sm:$0xff] %v619_v61  ;;  %v1576_v61 = vpop.xlane.xlu1 %428  ;;  %v456_v63 = vadd.f32 %v1531_v36, %v1563_v54  ;;  %v457_v54 = vadd.f32 %v1531_v36, %v1565_v60  ;;  %v458_v60 = vadd.f32 %v1531_v36, %v1554_v41  ;;  %v459_v41 = vadd.f32 %v1531_v36, %v1569_v1 }
 0x1e3   :  { %898 = vst [vmem:[#allocation1 + $0x4] ss:$9 sm:$0xff] %v620_v19  ;;  %v1058_v19 = vpop.permute.xlu2 %1057  ;;  %v460_v1 = vadd.f32 %v1531_v36, %v1572_v4  ;;  %v461_v4 = vadd.f32 %v1531_v36, %v1560_v52  ;;  %v462_v52 = vadd.f32 %v1531_v36, %v1574_v9  ;;  %v463_v9 = vadd.f32 %v1531_v36, %v1576_v61 }
 0x1e4   :  { %899 = vst [vmem:[#allocation1 + $0x5] ss:$9 sm:$0xff] %v621_v20  ;;  %v1582_v20 = vadd.s32 4294967288, %v1579_v18 }
 0x1e5   :  { %900 = vst [vmem:[#allocation1 + $0x6] ss:$9 sm:$0xff] %v622_v21  ;;  %v452_v21 = vadd.f32 %v1531_v36, %v1551_v31 }
 0x1e6   :  { %901 = vst [vmem:[#allocation1 + $0x7] ss:$9 sm:$0xff] %v623_v22  ;;  %v1052_v22 = vpop.permute.xlu0 %1051 }
 0x1e7   :  { %v1147_v23 = vperm.slane %v1052_v22, %v1582_v20  ;;  %v656_v24 = vperm.slane %v452_v21, 0  ;;  %v660_v38 = vperm.slane %v452_v21, 4  ;;  %v682_v22 = vperm.slane %v455_v50, 2 }
 0x1ed   :  { %v902_v28 = vld [vmem:[#allocation1] sm:$0xff] }
 0x1ee   :  { %903 = vst [vmem:[#allocation1] ss:$9 sm:$0xff] %v624_v25  ;;  %1093 = vperm.xlu2 %1287, %v902_v28   ;;  %v1055_v25 = vpop.permute.xlu1 %1054  ;;  %v1592_v28 = vadd.s32 4294967272, %v1579_v18 }
 0x1ef   :  { %904 = vst [vmem:[#allocation1 + $0x1] ss:$9 sm:$0xff] %v625_v26  ;;  %v657_v26 = vperm.slane %v452_v21, 1  ;;  %v1151_v31 = vperm.slane %v1055_v25, %v1588_v7  ;;  %v684_v25 = vperm.slane %v455_v50, 4 }
 0x1f0   :  { %905 = vst [vmem:[#allocation1 + $0x2] ss:$9 sm:$0xff] %v626_v27  ;;  %v1145_v27 = vperm.slane %v1049_v6, %v1579_v18  ;;  %v672_v6 = vperm.slane %v454_v3, 0 }
 0x1f1   :  { %906 = vst [vmem:[#allocation1 + $0x3] ss:$9 sm:$0xff] %v627_v29  ;;  %v658_v29 = vperm.slane %v452_v21, 2 }
 0x1f2   :  { %907 = vst [vmem:[#allocation1 + $0x4] ss:$9 sm:$0xff] %v628_v30  ;;  %v1595_v30 = vadd.s32 4294967264, %v1579_v18 }
 0x1f3   :  { %908 = vst [vmem:[#allocation1 + $0x5] ss:$9 sm:$0xff] %v629_v32  ;;  %v659_v32 = vperm.slane %v452_v21, 3 }
 0x1f4   :  { %909 = vst [vmem:[#allocation1 + $0x6] ss:$9 sm:$0xff] %v630_v35  ;;  %v1061_v35 = vpop.permute.xlu2 %1060 }
 0x1f5   :  { %910 = vst [vmem:[#allocation1 + $0x7] ss:$9 sm:$0xff] %v631_v37  ;;  %v1149_v37 = vsel %vm1148_vm3, %v1147_v23, %v1145_v27  ;;  %v683_v23 = vperm.slane %v455_v50, 3  ;;  %v686_v27 = vperm.slane %v455_v50, 6 }
 0x1f6   :  { %v1153_v39 = vsel %vm1152_vm4, %v1151_v31, %v1149_v37  ;;  %v688_v31 = vperm.slane %v456_v63, 0  ;;  %v691_v37 = vperm.slane %v456_v63, 3 }
 0x1fc   :  { %v911_v33 = vld [vmem:[#allocation1] sm:$0xff]  ;;  %v1067_v61 = vpop.permute.xlu2 %1066 }
 0x1fd   :  { %912 = vst [vmem:[#allocation1] ss:$9 sm:$0xff] %v632_v40  ;;  %1096 = vperm.xlu1 %1289, %v911_v33   ;;  %v661_v40 = vperm.slane %v452_v21, 5  ;;  %v663_v33 = vperm.slane %v452_v21, 7 }
 0x1fe   :  { %913 = vst [vmem:[#allocation1 + $0x1] ss:$9 sm:$0xff] %v633_v42  ;;  %v1155_v42 = vperm.slane %v1058_v19, %v1592_v28  ;;  %v680_v19 = vperm.slane %v455_v50, 0 }
 0x1ff   :  { %914 = vst [vmem:[#allocation1 + $0x2] ss:$9 sm:$0xff] %v634_v44  ;;  %v662_v44 = vperm.slane %v452_v21, 6  ;;  %v681_v21 = vperm.slane %v455_v50, 1 }
 0x200   :  { %915 = vst [vmem:[#allocation1 + $0x3] ss:$9 sm:$0xff] %v635_v45  ;;  %v1159_v45 = vperm.slane %v1061_v35, %v1595_v30  ;;  %v690_v35 = vperm.slane %v456_v63, 2 }
 0x201   :  { %916 = vst [vmem:[#allocation1 + $0x4] ss:$9 sm:$0xff] %v636_v46  ;;  %v1157_v46 = vsel %vm1156_vm5, %v1155_v42, %v1153_v39  ;;  %v693_v39 = vperm.slane %v456_v63, 5  ;;  %v695_v42 = vperm.slane %v456_v63, 7 }
 0x202   :  { %917 = vst [vmem:[#allocation1 + $0x5] ss:$9 sm:$0xff] %v637_v47  ;;  %v1161_v47 = vsel %vm1160_vm6, %v1159_v45, %v1157_v46  ;;  %v698_v46 = vperm.slane %v457_v54, 2 }
 0x203   :  { %918 = vst [vmem:[#allocation1 + $0x6] ss:$9 sm:$0xff] %v638_v48  ;;  %v453_v48 = vadd.f32 %v1531_v36, %v1556_v43  ;;  %v1064_v43 = vpop.permute.xlu1 %1063 }
 0x204   :  { %919 = vst [vmem:[#allocation1 + $0x7] ss:$9 sm:$0xff] %v639_v49 }
 0x205   :  { %v664_v49 = vperm.slane %v453_v48, 0  ;;  %v665_v53 = vperm.slane %v453_v48, 1 }
 0x20b   :  { %v920_v58 = vld [vmem:[#allocation1] sm:$0xff] }
 0x20c   :  { %921 = vst [vmem:[#allocation1] ss:$9 sm:$0xff] %v640_v51  ;;  %1099 = vperm.xlu0 %1288, %v920_v58   ;;  %v666_v51 = vperm.slane %v453_v48, 2  ;;  %v669_v58 = vperm.slane %v453_v48, 5 }
 0x20d   :  { %922 = vst [vmem:[#allocation1 + $0x1] ss:$9 sm:$0xff] %v641_v55  ;;  %v667_v55 = vperm.slane %v453_v48, 3 }
 0x20e   :  { %923 = vst [vmem:[#allocation1 + $0x2] ss:$9 sm:$0xff] %v642_v56 }
 0x20f   :  { %924 = vst [vmem:[#allocation1 + $0x3] ss:$9 sm:$0xff] %v643_v57  ;;  %v668_v57 = vperm.slane %v453_v48, 4 }
 0x210   :  { %925 = vst [vmem:[#allocation1 + $0x4] ss:$9 sm:$0xff] %v644_v59  ;;  %v670_v59 = vperm.slane %v453_v48, 6 }
 0x211   :  { %926 = vst [vmem:[#allocation1 + $0x5] ss:$9 sm:$0xff] %v645_v62  ;;  %v671_v62 = vperm.slane %v453_v48, 7  ;;  %v700_v48 = vperm.slane %v457_v54, 4 }
 0x212   :  { %927 = vst [vmem:[#allocation1 + $0x6] ss:$9 sm:$0xff] %v646_v0  ;;  %v1607_v0 = vadd.s32 4294967256, %v1579_v18 }
 0x213   :  { %928 = vst [vmem:[#allocation1 + $0x7] ss:$9 sm:$0xff] %v647_v2 }
 0x214   :  { %v1163_v2 = vperm.slane %v1064_v43, %v1607_v0  ;;  %v709_v43 = vperm.slane %v458_v60, 5 }
 0x21a   :  { %v929_v11 = vld [vmem:[#allocation1] sm:$0xff] }
 0x21b   :  { %930 = vst [vmem:[#allocation1] ss:$9 sm:$0xff] %v648_v5  ;;  %1102 = vperm.xlu2 %1287, %v929_v11   ;;  %v1613_v5 = vsel %vm1164_vm7, %v1163_v2, %v1161_v47  ;;  %v699_v47 = vperm.slane %v457_v54, 3  ;;  %v710_v2 = vperm.slane %v458_v60, 6 }
 0x21c   :  { %931 = vst [vmem:[#allocation1 + $0x1] ss:$9 sm:$0xff] %v649_v8  ;;  %v673_v8 = vperm.slane %v454_v3, 1 }
 0x21d   :  { %932 = vst [vmem:[#allocation1 + $0x2] ss:$9 sm:$0xff] %v650_v10  ;;  %v674_v10 = vperm.slane %v454_v3, 2 }
 0x21e   :  { %933 = vst [vmem:[#allocation1 + $0x3] ss:$9 sm:$0xff] %v651_v12  ;;  %v675_v12 = vperm.slane %v454_v3, 3 }
 0x21f   :  { %934 = vst [vmem:[#allocation1 + $0x4] ss:$9 sm:$0xff] %v652_v13  ;;  %v676_v13 = vperm.slane %v454_v3, 4 }
 0x220   :  { %935 = vst [vmem:[#allocation1 + $0x5] ss:$9 sm:$0xff] %v653_v15  ;;  %v677_v15 = vperm.slane %v454_v3, 5 }
 0x221   :  { %936 = vst [vmem:[#allocation1 + $0x6] ss:$9 sm:$0xff] %v654_v16  ;;  %v678_v16 = vperm.slane %v454_v3, 6 }
 0x222   :  { %937 = vst [vmem:[#allocation1 + $0x7] ss:$9 sm:$0xff] %v655_v17  ;;  %v679_v17 = vperm.slane %v454_v3, 7  ;;  %v711_v3 = vperm.slane %v458_v60, 7 }
 0x229   :  { %v938_v34 = vld [vmem:[#allocation1] sm:$0xff] }
 0x22a   :  { %939 = vst [vmem:[#allocation1] ss:$9 sm:$0xff] %v656_v24  ;;  %1105 = vperm.xlu1 %1289, %v938_v34  }
 0x22b   :  { %940 = vst [vmem:[#allocation1 + $0x1] ss:$9 sm:$0xff] %v657_v26  ;;  %v685_v26 = vperm.slane %v455_v50, 5 }
 0x22c   :  { %941 = vst [vmem:[#allocation1 + $0x2] ss:$9 sm:$0xff] %v658_v29  ;;  %v687_v29 = vperm.slane %v455_v50, 7  ;;  %v720_v50 = vperm.slane %v460_v1, 0 }
 0x22d   :  { %942 = vst [vmem:[#allocation1 + $0x3] ss:$9 sm:$0xff] %v659_v32  ;;  %v689_v32 = vperm.slane %v456_v63, 1 }
 0x22e   :  { %943 = vst [vmem:[#allocation1 + $0x4] ss:$9 sm:$0xff] %v660_v38  ;;  %v692_v38 = vperm.slane %v456_v63, 4 }
 0x22f   :  { %944 = vst [vmem:[#allocation1 + $0x5] ss:$9 sm:$0xff] %v661_v40  ;;  %v694_v40 = vperm.slane %v456_v63, 6  ;;  %v729_v63 = vperm.slane %v461_v4, 1 }
 0x230   :  { %945 = vst [vmem:[#allocation1 + $0x6] ss:$9 sm:$0xff] %v662_v44  ;;  %v696_v44 = vperm.slane %v457_v54, 0 }
 0x231   :  { %946 = vst [vmem:[#allocation1 + $0x7] ss:$9 sm:$0xff] %v663_v33  ;;  %v697_v33 = vperm.slane %v457_v54, 1 }
 0x238   :  { %v947_v56 = vld [vmem:[#allocation1] sm:$0xff] }
 0x239   :  { %948 = vst [vmem:[#allocation1] ss:$9 sm:$0xff] %v664_v49  ;;  %1108 = vperm.xlu0 %1288, %v947_v56   ;;  %v701_v49 = vperm.slane %v457_v54, 5  ;;  %v705_v56 = vperm.slane %v458_v60, 1 }
 0x23a   :  { %949 = vst [vmem:[#allocation1 + $0x1] ss:$9 sm:$0xff] %v665_v53  ;;  %v702_v53 = vperm.slane %v457_v54, 6 }
 0x23b   :  { %950 = vst [vmem:[#allocation1 + $0x2] ss:$9 sm:$0xff] %v666_v51  ;;  %v703_v51 = vperm.slane %v457_v54, 7  ;;  %v738_v54 = vperm.slane %v462_v52, 2 }
 0x23c   :  { %951 = vst [vmem:[#allocation1 + $0x3] ss:$9 sm:$0xff] %v667_v55  ;;  %v704_v55 = vperm.slane %v458_v60, 0 }
 0x23d   :  { %952 = vst [vmem:[#allocation1 + $0x4] ss:$9 sm:$0xff] %v668_v57 }
 0x23e   :  { %953 = vst [vmem:[#allocation1 + $0x5] ss:$9 sm:$0xff] %v669_v58  ;;  %v706_v58 = vperm.slane %v458_v60, 2 }
 0x23f   :  { %954 = vst [vmem:[#allocation1 + $0x6] ss:$9 sm:$0xff] %v670_v59  ;;  %v707_v59 = vperm.slane %v458_v60, 3 }
 0x240   :  { %955 = vst [vmem:[#allocation1 + $0x7] ss:$9 sm:$0xff] %v671_v62  ;;  %v708_v62 = vperm.slane %v458_v60, 4  ;;  %v747_v60 = vperm.slane %v463_v9, 3 }
 0x247   :  { %v956_v11 = vld [vmem:[#allocation1] sm:$0xff] }
 0x248   :  { %957 = vst [vmem:[#allocation1] ss:$9 sm:$0xff] %v672_v6  ;;  %1111 = vperm.xlu2 %1287, %v956_v11   ;;  %v712_v6 = vperm.slane %v459_v41, 0  ;;  %v714_v11 = vperm.slane %v459_v41, 2 }
 0x249   :  { %958 = vst [vmem:[#allocation1 + $0x1] ss:$9 sm:$0xff] %v673_v8  ;;  %v713_v8 = vperm.slane %v459_v41, 1 }
 0x24a   :  { %959 = vst [vmem:[#allocation1 + $0x2] ss:$9 sm:$0xff] %v674_v10 }
 0x24b   :  { %960 = vst [vmem:[#allocation1 + $0x3] ss:$9 sm:$0xff] %v675_v12  ;;  %v715_v12 = vperm.slane %v459_v41, 3 }
 0x24c   :  { %961 = vst [vmem:[#allocation1 + $0x4] ss:$9 sm:$0xff] %v676_v13  ;;  %v716_v13 = vperm.slane %v459_v41, 4 }
 0x24d   :  { %962 = vst [vmem:[#allocation1 + $0x5] ss:$9 sm:$0xff] %v677_v15  ;;  %v717_v15 = vperm.slane %v459_v41, 5 }
 0x24e   :  { %963 = vst [vmem:[#allocation1 + $0x6] ss:$9 sm:$0xff] %v678_v16  ;;  %v718_v16 = vperm.slane %v459_v41, 6 }
 0x24f   :  { %964 = vst [vmem:[#allocation1 + $0x7] ss:$9 sm:$0xff] %v679_v17  ;;  %v719_v17 = vperm.slane %v459_v41, 7 }
 0x256   :  { %v965_v24 = vld [vmem:[#allocation1] sm:$0xff] }
 0x257   :  { %966 = vst [vmem:[#allocation1] ss:$9 sm:$0xff] %v680_v19  ;;  %1114 = vperm.xlu1 %1289, %v965_v24   ;;  %v721_v19 = vperm.slane %v460_v1, 1  ;;  %v724_v24 = vperm.slane %v460_v1, 4 }
 0x258   :  { %967 = vst [vmem:[#allocation1 + $0x1] ss:$9 sm:$0xff] %v681_v21 }
 0x259   :  { %968 = vst [vmem:[#allocation1 + $0x2] ss:$9 sm:$0xff] %v682_v22  ;;  %v722_v22 = vperm.slane %v460_v1, 2 }
 0x25a   :  { %969 = vst [vmem:[#allocation1 + $0x3] ss:$9 sm:$0xff] %v683_v23  ;;  %v723_v23 = vperm.slane %v460_v1, 3 }
 0x25b   :  { %970 = vst [vmem:[#allocation1 + $0x4] ss:$9 sm:$0xff] %v684_v25  ;;  %v725_v25 = vperm.slane %v460_v1, 5 }
 0x25c   :  { %971 = vst [vmem:[#allocation1 + $0x5] ss:$9 sm:$0xff] %v685_v26  ;;  %v726_v26 = vperm.slane %v460_v1, 6 }
 0x25d   :  { %972 = vst [vmem:[#allocation1 + $0x6] ss:$9 sm:$0xff] %v686_v27  ;;  %v727_v27 = vperm.slane %v460_v1, 7 }
 0x25e   :  { %973 = vst [vmem:[#allocation1 + $0x7] ss:$9 sm:$0xff] %v687_v29  ;;  %v728_v29 = vperm.slane %v461_v4, 0 }
 0x265   :  { %v974_v34 = vld [vmem:[#allocation1] sm:$0xff] }
 0x266   :  { %975 = vst [vmem:[#allocation1] ss:$9 sm:$0xff] %v688_v31  ;;  %1117 = vperm.xlu0 %1288, %v974_v34   ;;  %v731_v34 = vperm.slane %v461_v4, 3 }
 0x267   :  { %976 = vst [vmem:[#allocation1 + $0x1] ss:$9 sm:$0xff] %v689_v32  ;;  %v730_v32 = vperm.slane %v461_v4, 2 }
 0x268   :  { %977 = vst [vmem:[#allocation1 + $0x2] ss:$9 sm:$0xff] %v690_v35  ;;  %v732_v35 = vperm.slane %v461_v4, 4 }
 0x269   :  { %978 = vst [vmem:[#allocation1 + $0x3] ss:$9 sm:$0xff] %v691_v37  ;;  %v733_v37 = vperm.slane %v461_v4, 5 }
 0x26a   :  { %979 = vst [vmem:[#allocation1 + $0x4] ss:$9 sm:$0xff] %v692_v38  ;;  %v734_v38 = vperm.slane %v461_v4, 6 }
 0x26b   :  { %980 = vst [vmem:[#allocation1 + $0x5] ss:$9 sm:$0xff] %v693_v39  ;;  %v735_v39 = vperm.slane %v461_v4, 7  ;;  %v1166_v4 = vadd.s32 4294967248, %v1579_v18 }
 0x26c   :  { %981 = vst [vmem:[#allocation1 + $0x6] ss:$9 sm:$0xff] %v694_v40  ;;  %v736_v40 = vperm.slane %v462_v52, 0 }
 0x26d   :  { %982 = vst [vmem:[#allocation1 + $0x7] ss:$9 sm:$0xff] %v695_v42  ;;  %v737_v42 = vperm.slane %v462_v52, 1 }
 0x274   :  { %v983_v45 = vld [vmem:[#allocation1] sm:$0xff] }
 0x275   :  { %984 = vst [vmem:[#allocation1] ss:$9 sm:$0xff] %v696_v44  ;;  %1120 = vperm.xlu2 %1287, %v983_v45   ;;  %v739_v44 = vperm.slane %v462_v52, 3 }
 0x276   :  { %985 = vst [vmem:[#allocation1 + $0x1] ss:$9 sm:$0xff] %v697_v33  ;;  %v740_v33 = vperm.slane %v462_v52, 4 }
 0x277   :  { %986 = vst [vmem:[#allocation1 + $0x2] ss:$9 sm:$0xff] %v698_v46  ;;  %v741_v46 = vperm.slane %v462_v52, 5 }
 0x278   :  { %987 = vst [vmem:[#allocation1 + $0x3] ss:$9 sm:$0xff] %v699_v47  ;;  %v742_v47 = vperm.slane %v462_v52, 6 }
 0x279   :  { %988 = vst [vmem:[#allocation1 + $0x4] ss:$9 sm:$0xff] %v700_v48  ;;  %v743_v48 = vperm.slane %v462_v52, 7 }
 0x27a   :  { %989 = vst [vmem:[#allocation1 + $0x5] ss:$9 sm:$0xff] %v701_v49  ;;  %v744_v49 = vperm.slane %v463_v9, 0 }
 0x27b   :  { %990 = vst [vmem:[#allocation1 + $0x6] ss:$9 sm:$0xff] %v702_v53  ;;  %v745_v53 = vperm.slane %v463_v9, 1 }
 0x27c   :  { %991 = vst [vmem:[#allocation1 + $0x7] ss:$9 sm:$0xff] %v703_v51  ;;  %v746_v51 = vperm.slane %v463_v9, 2 }
 0x283   :  { %v992_v57 = vld [vmem:[#allocation1] sm:$0xff] }
 0x284   :  { %993 = vst [vmem:[#allocation1] ss:$9 sm:$0xff] %v704_v55  ;;  %1123 = vperm.xlu1 %1289, %v992_v57   ;;  %v749_v57 = vperm.slane %v463_v9, 5 }
 0x285   :  { %994 = vst [vmem:[#allocation1 + $0x1] ss:$9 sm:$0xff] %v705_v56  ;;  %v748_v56 = vperm.slane %v463_v9, 4 }
 0x286   :  { %995 = vst [vmem:[#allocation1 + $0x2] ss:$9 sm:$0xff] %v706_v58  ;;  %v750_v58 = vperm.slane %v463_v9, 6 }
 0x287   :  { %996 = vst [vmem:[#allocation1 + $0x3] ss:$9 sm:$0xff] %v707_v59  ;;  %v751_v59 = vperm.slane %v463_v9, 7 }
 0x288   :  { %997 = vst [vmem:[#allocation1 + $0x4] ss:$9 sm:$0xff] %v708_v62  ;;  %v1070_v62 = vpop.permute.xlu1 %1069 }
 0x289   :  { %998 = vst [vmem:[#allocation1 + $0x5] ss:$9 sm:$0xff] %v709_v43  ;;  %v1073_v43 = vpop.permute.xlu0 %1072 }
 0x28a   :  { %999 = vst [vmem:[#allocation1 + $0x6] ss:$9 sm:$0xff] %v710_v2  ;;  %v1633_v2 = vpop.permute.xlu2 %1075 }
 0x28b   :  { %1000 = vst [vmem:[#allocation1 + $0x7] ss:$9 sm:$0xff] %v711_v3 }
 0x290   :  { %v1635_v3 = vpop.permute.xlu1 %1078 }
 0x291   :  { %v1637_v41 = vpop.permute.xlu0 %1081 }
 0x292   :  { %v1001_v10 = vld [vmem:[#allocation1] sm:$0xff] }
 0x293   :  { %1126 = vperm.xlu0 %1288, %v1001_v10   ;;  %1002 = vst [vmem:[#allocation1] ss:$9 sm:$0xff] %v712_v6  ;;  %v1639_v6 = vpop.permute.xlu2 %1084 }
 0x294   :  { %1003 = vst [vmem:[#allocation1 + $0x1] ss:$9 sm:$0xff] %v713_v8 }
 0x295   :  { %1004 = vst [vmem:[#allocation1 + $0x2] ss:$9 sm:$0xff] %v714_v11 }
 0x296   :  { %1005 = vst [vmem:[#allocation1 + $0x3] ss:$9 sm:$0xff] %v715_v12 }
 0x297   :  { %1006 = vst [vmem:[#allocation1 + $0x4] ss:$9 sm:$0xff] %v716_v13 }
 0x298   :  { %1007 = vst [vmem:[#allocation1 + $0x5] ss:$9 sm:$0xff] %v717_v15  ;;  %v1641_v8 = vpop.permute.xlu1 %1087 }
 0x299   :  { %1008 = vst [vmem:[#allocation1 + $0x6] ss:$9 sm:$0xff] %v718_v16  ;;  %v1643_v10 = vpop.permute.xlu0 %1090 }
 0x29a   :  { %1009 = vst [vmem:[#allocation1 + $0x7] ss:$9 sm:$0xff] %v719_v17 }
 0x29b   :  { %v1645_v11 = vpop.permute.xlu2 %1093 }
 0x2a0   :  { %v1097_v12 = vpop.permute.xlu1 %1096 }
 0x2a1   :  { %v1010_v21 = vld [vmem:[#allocation1] sm:$0xff]  ;;  %v1100_v13 = vpop.permute.xlu0 %1099 }
 0x2a2   :  { %1129 = vperm.xlu2 %1287, %v1010_v21   ;;  %1011 = vst [vmem:[#allocation1] ss:$9 sm:$0xff] %v720_v50  ;;  %v1207_v50 = vperm.slane %v1100_v13, %v1582_v20  ;;  %v1174_v20 = vadd.s32 4294967232, %v1579_v18 }
 0x2a3   :  { %1012 = vst [vmem:[#allocation1 + $0x1] ss:$9 sm:$0xff] %v721_v19  ;;  %v1103_v15 = vpop.permute.xlu2 %1102 }
 0x2a4   :  { %1013 = vst [vmem:[#allocation1 + $0x2] ss:$9 sm:$0xff] %v722_v22  ;;  %v1206_v22 = vperm.slane %v1097_v12, %v1579_v18  ;;  %v1175_v52 = vperm.slane %v1073_v43, %v1174_v20 }
 0x2a5   :  { %1014 = vst [vmem:[#allocation1 + $0x3] ss:$9 sm:$0xff] %v723_v23 }
 0x2a6   :  { %1015 = vst [vmem:[#allocation1 + $0x4] ss:$9 sm:$0xff] %v724_v24  ;;  %v1208_v23 = vsel %vm1148_vm3, %v1207_v50, %v1206_v22  ;;  %vm1243_vm3 = vcmp.lt.s32.totalorder %v1143_v14, 256 }
 0x2a7   :  { %1016 = vst [vmem:[#allocation1 + $0x5] ss:$9 sm:$0xff] %v725_v25  ;;  %v1209_v25 = vperm.slane %v1103_v15, %v1588_v7 }
 0x2a8   :  { %1017 = vst [vmem:[#allocation1 + $0x6] ss:$9 sm:$0xff] %v726_v26  ;;  %v1106_v16 = vpop.permute.xlu1 %1105 }
 0x2a9   :  { %1018 = vst [vmem:[#allocation1 + $0x7] ss:$9 sm:$0xff] %v727_v27  ;;  %v1211_v24 = vperm.slane %v1106_v16, %v1592_v28 }
 0x2ab   :  { %v1109_v17 = vpop.permute.xlu0 %1108  ;;  %v1112_v1 = vpop.permute.xlu2 %1111 }
 0x2ac   :  { %v1213_v26 = vperm.slane %v1109_v17, %v1595_v30  ;;  %v1215_v7 = vperm.slane %v1112_v1, %v1607_v0  ;;  %v1167_v30 = vperm.slane %v1067_v61, %v1166_v4 }
 0x2b0   :  { %v1019_v31 = vld [vmem:[#allocation1] sm:$0xff] }
 0x2b1   :  { %1132 = vperm.xlu1 %1289, %v1019_v31   ;;  %1020 = vst [vmem:[#allocation1] ss:$9 sm:$0xff] %v728_v29  ;;  %v1170_v29 = vadd.s32 4294967240, %v1579_v18 }
 0x2b2   :  { %1021 = vst [vmem:[#allocation1 + $0x1] ss:$9 sm:$0xff] %v729_v63  ;;  %v1210_v63 = vsel %vm1152_vm4, %v1209_v25, %v1208_v23 }
 0x2b3   :  { %1022 = vst [vmem:[#allocation1 + $0x2] ss:$9 sm:$0xff] %v730_v32  ;;  %v1212_v31 = vsel %vm1156_vm5, %v1211_v24, %v1210_v63 }
 0x2b4   :  { %1023 = vst [vmem:[#allocation1 + $0x3] ss:$9 sm:$0xff] %v731_v34  ;;  %v1214_v34 = vsel %vm1160_vm6, %v1213_v26, %v1212_v31 }
 0x2b5   :  { %1024 = vst [vmem:[#allocation1 + $0x4] ss:$9 sm:$0xff] %v732_v35 }
 0x2b6   :  { %1025 = vst [vmem:[#allocation1 + $0x5] ss:$9 sm:$0xff] %v733_v37 }
 0x2b7   :  { %1026 = vst [vmem:[#allocation1 + $0x6] ss:$9 sm:$0xff] %v734_v38  ;;  %v1171_v38 = vperm.slane %v1070_v62, %v1170_v29 }
 0x2b8   :  { %1027 = vst [vmem:[#allocation1 + $0x7] ss:$9 sm:$0xff] %v735_v39  ;;  %v1178_v39 = vadd.s32 4294967224, %v1579_v18 }
 0x2bf   :  { %v1028_v45 = vld [vmem:[#allocation1] sm:$0xff] }
 0x2c0   :  { %1135 = vperm.xlu0 %1288, %v1028_v45   ;;  %1029 = vst [vmem:[#allocation1] ss:$9 sm:$0xff] %v736_v40  ;;  %v1216_v40 = vsel %vm1164_vm7, %v1215_v7, %v1214_v34  ;;  %v1186_v45 = vadd.s32 4294967208, %v1579_v18 }
 0x2c1   :  { %1030 = vst [vmem:[#allocation1 + $0x1] ss:$9 sm:$0xff] %v737_v42  ;;  %v1182_v42 = vadd.s32 4294967216, %v1579_v18 }
 0x2c2   :  { %1031 = vst [vmem:[#allocation1 + $0x2] ss:$9 sm:$0xff] %v738_v54 }
 0x2c3   :  { %1032 = vst [vmem:[#allocation1 + $0x3] ss:$9 sm:$0xff] %v739_v44  ;;  %v1169_v44 = vsel %vm1168_vm8, %v1167_v30, %v1613_v5 }
 0x2c4   :  { %1033 = vst [vmem:[#allocation1 + $0x4] ss:$9 sm:$0xff] %v740_v33 }
 0x2c5   :  { %1034 = vst [vmem:[#allocation1 + $0x5] ss:$9 sm:$0xff] %v741_v46 }
 0x2c6   :  { %1035 = vst [vmem:[#allocation1 + $0x6] ss:$9 sm:$0xff] %v742_v47  ;;  %v1173_v47 = vsel %vm1172_vm9, %v1171_v38, %v1169_v44 }
 0x2c7   :  { %1036 = vst [vmem:[#allocation1 + $0x7] ss:$9 sm:$0xff] %v743_v48 }
 0x2c9   :  { %v1115_v19 = vpop.permute.xlu1 %1114 }
 0x2ca   :  { %v1217_v35 = vperm.slane %v1115_v19, %v1166_v4  ;;  %v1202_v19 = vadd.s32 4294967176, %v1579_v18 }
 0x2cc   :  { %v1218_v54 = vsel %vm1168_vm8, %v1217_v35, %v1216_v40  ;;  %v1203_v4 = vperm.slane %v1645_v11, %v1202_v19 }
 0x2ce   :  { %v1037_v55 = vld [vmem:[#allocation1] sm:$0xff] }
 0x2cf   :  { %1138 = vperm.xlu2 %1287, %v1037_v55   ;;  %1038 = vst [vmem:[#allocation1] ss:$9 sm:$0xff] %v744_v49  ;;  %v1121_v27 = vpop.permute.xlu2 %1120  ;;  %v1179_v49 = vperm.slane %v1633_v2, %v1178_v39  ;;  %v1183_v55 = vperm.slane %v1635_v3, %v1182_v42 }
 0x2d0   :  { %1039 = vst [vmem:[#allocation1 + $0x1] ss:$9 sm:$0xff] %v745_v53  ;;  %v1221_v48 = vperm.slane %v1121_v27, %v1174_v20  ;;  %v1177_v53 = vsel %vm1176_vm10, %v1175_v52, %v1173_v47 }
 0x2d1   :  { %1040 = vst [vmem:[#allocation1 + $0x2] ss:$9 sm:$0xff] %v746_v51  ;;  %v1181_v43 = vsel %vm1180_vm11, %v1179_v49, %v1177_v53 }
 0x2d2   :  { %1041 = vst [vmem:[#allocation1 + $0x3] ss:$9 sm:$0xff] %v747_v60  ;;  %v1190_v60 = vadd.s32 4294967200, %v1579_v18  ;;  %v1185_v13 = vsel %vm1184_vm12, %v1183_v55, %v1181_v43 }
 0x2d3   :  { %1042 = vst [vmem:[#allocation1 + $0x4] ss:$9 sm:$0xff] %v748_v56 }
 0x2d4   :  { %1043 = vst [vmem:[#allocation1 + $0x5] ss:$9 sm:$0xff] %v749_v57  ;;  %v1187_v57 = vperm.slane %v1637_v41, %v1186_v45  ;;  %v1191_v41 = vperm.slane %v1639_v6, %v1190_v60 }
 0x2d5   :  { %1044 = vst [vmem:[#allocation1 + $0x6] ss:$9 sm:$0xff] %v750_v58  ;;  %v1194_v58 = vadd.s32 4294967192, %v1579_v18 }
 0x2d6   :  { %1045 = vst [vmem:[#allocation1 + $0x7] ss:$9 sm:$0xff] %v751_v59  ;;  %v1189_v15 = vsel %vm1188_vm13, %v1187_v57, %v1185_v13 }
 0x2d7   :  { %v1195_v3 = vperm.slane %v1641_v8, %v1194_v58  ;;  %v1193_v22 = vsel %vm1192_vm14, %v1191_v41, %v1189_v15 }
 0x2d8   :  { %v1118_v21 = vpop.permute.xlu0 %1117 }
 0x2d9   :  { %v1219_v37 = vperm.slane %v1118_v21, %v1170_v29  ;;  %v1197_v25 = vsel %vm1196_vm15, %v1195_v3, %v1193_v22 }
 0x2db   :  { %v1220_v33 = vsel %vm1172_vm9, %v1219_v37, %v1218_v54 }
 0x2dc   :  { %v1222_v5 = vsel %vm1176_vm10, %v1221_v48, %v1220_v33 }
 0x2dd   :  { %v1046_v36 = vld [vmem:[#allocation1] sm:$0xff] }
 0x2de   :  { %1141 = vperm.xlu1 %1289, %v1046_v36   ;;  %v1198_v36 = vadd.s32 4294967184, %v1579_v18 }
 0x2e0   :  { %v1199_v1 = vperm.slane %v1643_v10, %v1198_v36 }
 0x2e2   :  { %v1201_v27 = vsel %vm1200_vm0, %v1199_v1, %v1197_v25 }
 0x2e3   :  { %v1205_v29 = vsel %vm1204_vm1, %v1203_v4, %v1201_v27 }
 0x2f6   :  { %v1124_v32 = vpop.permute.xlu1 %1123 }
 0x2f7   :  { %v1223_v46 = vperm.slane %v1124_v32, %v1178_v39 }
 0x2f9   :  { %v1224_v59 = vsel %vm1180_vm11, %v1223_v46, %v1222_v5 }
 0x2fc   :  { %v1130_v0 = vpop.permute.xlu2 %1129 }
 0x2fd   :  { %v1227_v2 = vperm.slane %v1130_v0, %v1186_v45 }
 0x305   :  { %v1127_v28 = vpop.permute.xlu0 %1126 }
 0x306   :  { %v1225_v9 = vperm.slane %v1127_v28, %v1182_v42 }
 0x308   :  { %v1226_v61 = vsel %vm1184_vm12, %v1225_v9, %v1224_v59 }
 0x309   :  { %v1228_v17 = vsel %vm1188_vm13, %v1227_v2, %v1226_v61 }
 0x323   :  { %v1133_v51 = vpop.permute.xlu1 %1132 }
 0x324   :  { %v1229_v62 = vperm.slane %v1133_v51, %v1190_v60 }
 0x326   :  { %v1230_v50 = vsel %vm1192_vm14, %v1229_v62, %v1228_v17 }
 0x329   :  { %v1139_v16 = vpop.permute.xlu2 %1138 }
 0x32a   :  { %v1233_v23 = vperm.slane %v1139_v16, %v1198_v36 }
 0x332   :  { %v1136_v56 = vpop.permute.xlu0 %1135 }
 0x333   :  { %v1231_v12 = vperm.slane %v1136_v56, %v1194_v58 }
 0x335   :  { %v1232_v21 = vsel %vm1196_vm15, %v1231_v12, %v1230_v50 }
 0x336   :  { %v1234_v8 = vsel %vm1200_vm0, %v1233_v23, %v1232_v21 }
 0x350   :  { %v1142_v24 = vpop.permute.xlu1 %1141 }
 0x351   :  { %v1235_v26 = vperm.slane %v1142_v24, %v1202_v19 }
 0x353   :  { %v1236_v6 = vsel %vm1204_vm1, %v1235_v26, %v1234_v8 }
 0x354   :  { %v1237_v10 = vrot.slane %v1236_v6, 7 }
 0x356   :  { %v1239_v63 = vsel %vm1238_vm2, %v1205_v29, %v1237_v10 }
 0x357   :  { %1245 = vst.msk [vmem:[%s1686_s4] sm:$0x3] %vm1243_vm3, %v1239_v63 }

</bundles_post_ra>
